<compile_context>
chip_gen: v7x
topology: tpu7x:2x2x1
jax: 0.10.0
libtpu: 0.0.40
codegen_flags: <defaults>
</compile_context>

<pallas_src>
from functools import partial

import numpy as np

import jax
import jax.numpy as jnp
from jax.experimental import pallas as pl
from jax.experimental.pallas import tpu as pltpu


def _round_up(x: int, m: int) -> int:
    return ((x + m - 1) // m) * m


def _fsq_constants(levels):
    eps = 1e-3
    lv = np.asarray(levels, dtype=np.int64)
    half_l = ((lv - 1).astype(np.float64) * (1.0 + eps) / 2.0).astype(np.float32)
    offset = np.where(lv % 2 == 0, 0.5, 0.0).astype(np.float32)
    shift = np.arctanh(offset / half_l).astype(np.float32)
    half_width = (lv // 2).astype(np.float32)
    basis = np.concatenate([[1], np.cumprod(lv[:-1])]).astype(np.float32)
    levels_f = lv.astype(np.float32)
    return half_l, offset, shift, half_width, basis, levels_f


def make_fsq_kernel(idx_base: float):
    """idx_base = sum(half_width * basis), a python scalar (lowers to a literal)."""

    def kernel(x_ref, w1t_ref, b1_ref, w2_ref, b2_ref, c_ref, recon_ref, idx_ref):
        # Token tile in its native dtype; compute in f32.
        x = x_ref[...].astype(jnp.float32)                          # (TM, H)

        # encoder_layer ∘ FSQ.project_in, weight stored transposed (D, H):
        # z = x @ W1^T + b1   (native MXU trans_b form, contraction on lanes).
        z = jax.lax.dot_general(
            x, w1t_ref[...],
            dimension_numbers=(((1,), (1,)), ((), ())),
            preferred_element_type=jnp.float32) + b1_ref[...]       # (TM, D)

        c = c_ref[...]                                              # (3, D) constants
        half_l = c[0:1, :]
        offset = c[1:2, :]
        basis = c[2:3, :]

        # FSQ.bound + round_ste (forward == round); q is the integer-valued code.
        q = jnp.round(jnp.tanh(z) * half_l - offset)                # (TM, D)

        # FSQ.project_out ∘ decoder_layer.  indices_to_codes is the exact inverse
        # of codes_to_indices on the lattice, so the decoder consumes q directly;
        # the 1/half_width code scale is pre-folded into W2.
        recon = jnp.dot(q, w2_ref[...],
                        preferred_element_type=jnp.float32) + b2_ref[...]
        recon_ref[...] = recon.astype(recon_ref.dtype)

        # codes_to_indices, emitted lane-dense: basis (1, D) @ q^T -> (1, TM).
        # Exact in f32 while prod(levels) < 2^24.
        idx_lane = jax.lax.dot_general(
            basis, q,
            dimension_numbers=(((1,), (1,)), ((), ())),
            preferred_element_type=jnp.float32)
        idx_ref[...] = jnp.round(idx_lane + idx_base).astype(jnp.int32)

    return kernel


def _derive_tile_and_vmem(N, H, in_itemsize, out_itemsize, max_block_tokens):
    """Pick the token-tile size from the device VMEM budget (v5e/v6e/v7x aware)."""
    try:
        vmem_cap = int(pltpu.get_tpu_info().vmem_capacity_bytes)
    except Exception:
        vmem_cap = 64 * 1024 * 1024          # conservative fallback: v7x per-TC VMEM
    vmem_limit = (vmem_cap * 3) // 4         # scoped-VMEM limit requested from Mosaic

    # Resident (constant index_map) weights/consts, double-buffered, sublane-padded.
    weights_bytes = 2 * 4 * (3 * 8 * max(H, 128) + 2 * 8 * 128)
    # Per-token VMEM: double-buffered x tile + recon tile, plus f32 lane-padded
    # (TM, D->128) intermediates (z / bounded / q) and slack.
    per_token = 2 * H * (in_itemsize + out_itemsize) + 4 * 128 * 4
    budget = max(vmem_limit // 2 - weights_bytes, 128 * per_token)
    tm = budget // per_token
    tm = min(tm,
             max_block_tokens,
             _round_up(pl.cdiv(N, 4), 128),  # >= 4 tiles so v7x's 2 TCs both get work
             _round_up(N, 128))              # never bigger than needed
    tm = max(128, (tm // 128) * 128)         # lane-aligned (idx lanes) & sublane-aligned
    return int(tm), int(vmem_limit)


@partial(jax.jit, static_argnames=("levels", "block_tokens"))
def fsq_distribution_forward(hidden_states, params, levels, block_tokens=None):
    B, S, H = hidden_states.shape
    D = len(levels)
    N = B * S
    io_dtype = hidden_states.dtype
    io_bytes = jnp.dtype(io_dtype).itemsize

    half_l, offset, shift, half_width, basis, _ = _fsq_constants(levels)

    # Host-side algebraic fusion of the two Linear pairs (f32, one-time cost).
    w1t = jnp.dot(params["w_enc"], params["w_in"]).T                       # (D, H)
    b1 = jnp.dot(params["b_enc"], params["w_in"]) + params["b_in"] + shift[None, :]
    w2 = jnp.dot(params["w_out"] / half_width[:, None], params["w_dec"])   # (D, H)
    b2 = jnp.dot(params["b_out"], params["w_dec"]) + params["b_dec"]       # (1, H)
    consts = jnp.asarray(np.stack([half_l, offset, basis]))                # (3, D)
    idx_base = float(np.sum(half_width * basis))

    tm, vmem_limit = _derive_tile_and_vmem(N, H, io_bytes, io_bytes,
                                           block_tokens or 1024)
    grid = pl.cdiv(N, tm)

    # Native dtype, no padding, no extra HBM passes (reshape is layout-preserving).
    x2d = hidden_states.reshape(N, H)

    flops = 4 * N * H * D + 4 * N * D
    bytes_accessed = (2 * N * H * io_bytes + N * 4
                      + 4 * int(w1t.size + b1.size + w2.size + b2.size + consts.size))

    recon2d, idx_row = pl.pallas_call(
        make_fsq_kernel(idx_base),
        out_shape=(jax.ShapeDtypeStruct((N, H), io_dtype),
                   jax.ShapeDtypeStruct((1, N), jnp.int32)),
        grid=(grid,),
        in_specs=[
            pl.BlockSpec((tm, H), lambda i: (i, 0)),   # token tile (native dtype)
            pl.BlockSpec((D, H), lambda i: (0, 0)),    # fused W1^T (resident)
            pl.BlockSpec((1, D), lambda i: (0, 0)),    # fused b1 (+ tanh shift)
            pl.BlockSpec((D, H), lambda i: (0, 0)),    # fused W2 (code scale folded in)
            pl.BlockSpec((1, H), lambda i: (0, 0)),    # fused b2
            pl.BlockSpec((3, D), lambda i: (0, 0)),    # [half_l; offset; basis]
        ],
        out_specs=(pl.BlockSpec((tm, H), lambda i: (i, 0)),   # recon, native dtype
                   pl.BlockSpec((1, tm), lambda i: (0, i))),  # lane-dense indices
        compiler_params=pltpu.CompilerParams(
            dimension_semantics=("parallel",),
            vmem_limit_bytes=vmem_limit),
        cost_estimate=pl.CostEstimate(flops=int(flops),
                                      transcendentals=int(N * D),
                                      bytes_accessed=int(bytes_accessed)),
    )(x2d, w1t, b1, w2, b2, consts)

    recon = recon2d.reshape(B, S, H)
    indices = idx_row.reshape(B, S)       # num_codebooks=1, no codebook dim
    # TODO(synk): serpentvae's modified FSQ returns an "entropy auxiliary loss";
    # plain FSQ has none, so it is a constant zero scalar here.
    entropy_aux_loss = jnp.zeros((), jnp.float32)
    return recon, indices, entropy_aux_loss


def init_params(key, hidden_dim, latent_dim, codebook_dim):
    """Deterministic nn.Linear-style init (uniform +-1/sqrt(fan_in)).

    NOTE: the PyTorch module's __init__ does not define `decoder_layer` (used in
    forward); we define it here as Linear(latent_dim, hidden_dim).
    Weights are stored as (in_dim, out_dim) so x @ W + b == nn.Linear(x).
    """
    def linear(k, fan_in, fan_out):
        kw, kb = jax.random.split(k)
        bound = 1.0 / np.sqrt(fan_in)
        w = jax.random.uniform(kw, (fan_in, fan_out), jnp.float32, -bound, bound)
        b = jax.random.uniform(kb, (1, fan_out), jnp.float32, -bound, bound)
        return w, b

    k1, k2, k3, k4 = jax.random.split(key, 4)
    w_enc, b_enc = linear(k1, hidden_dim, latent_dim)     # encoder_layer
    w_in, b_in = linear(k2, latent_dim, codebook_dim)     # FSQ.project_in
    w_out, b_out = linear(k3, codebook_dim, latent_dim)   # FSQ.project_out
    w_dec, b_dec = linear(k4, latent_dim, hidden_dim)     # decoder_layer
    return dict(w_enc=w_enc, b_enc=b_enc, w_in=w_in, b_in=b_in,
                w_out=w_out, b_out=b_out, w_dec=w_dec, b_dec=b_dec)


def reference_forward(hidden_states, params, levels):
    """Pure-JAX reference mirroring the (unfused) PyTorch module semantics."""
    half_l, offset, shift, half_width, basis, levels_f = _fsq_constants(levels)
    hp = dict(precision=jax.lax.Precision.HIGHEST)
    x = hidden_states.astype(jnp.float32)
    lat = jnp.dot(x, params["w_enc"], **hp) + params["b_enc"]        # encoder_layer
    z = jnp.dot(lat, params["w_in"], **hp) + params["b_in"]          # FSQ.project_in
    bounded = jnp.tanh(z + shift) * half_l - offset                  # FSQ.bound
    codes = jnp.round(bounded) / half_width                          # round_ste + renorm
    scaled = codes * half_width + half_width
    idx = jnp.sum(scaled * basis, axis=-1).astype(jnp.int32)         # codes_to_indices
    digit = jnp.floor(idx[..., None].astype(jnp.float32) / basis)    # indices_to_codes
    digit = digit - jnp.floor(digit / levels_f) * levels_f
    codes2 = (digit - half_width) / half_width
    lat2 = jnp.dot(codes2, params["w_out"], **hp) + params["b_out"]  # FSQ.project_out
    recon = jnp.dot(lat2, params["w_dec"], **hp) + params["b_dec"]   # decoder_layer
    return recon, idx, jnp.zeros((), jnp.float32)


if __name__ == "__main__":
    # Keep kernel / host fusion / reference matmuls at full f32 precision so the
    # exact-integer index comparison is meaningful.
    jax.config.update("jax_default_matmul_precision", "highest")

    levels = (8, 5, 5, 5)          # codebook_dim = 4
    B, S, H, L = 2, 8, 32, 8       # batch, seq, hidden_dim, latent_dim

    key = jax.random.PRNGKey(0)
    kx, kp = jax.random.split(key)
    hidden_states = jax.random.normal(kx, (B, S, H), jnp.float32)
    params = init_params(kp, H, L, len(levels))

    recon, indices, aux = fsq_distribution_forward(hidden_states, params, levels)
    jax.block_until_ready((recon, indices, aux))

    r_ref, i_ref, _ = reference_forward(hidden_states, params, levels)
    np.testing.assert_allclose(np.asarray(recon), np.asarray(r_ref), rtol=1e-4, atol=1e-4)
    np.testing.assert_array_equal(np.asarray(indices), np.asarray(i_ref))
    assert recon.dtype == hidden_states.dtype
    assert recon.shape == (B, S, H) and indices.shape == (B, S) and aux.shape == ()

    # Native-dtype (bf16) I/O smoke run — the main bandwidth lever on real shapes.
    hs_bf16 = hidden_states.astype(jnp.bfloat16)
    r16, i16, _ = fsq_distribution_forward(hs_bf16, params, levels)
    jax.block_until_ready((r16, i16))
    assert r16.dtype == jnp.bfloat16 and r16.shape == (B, S, H) and i16.shape == (B, S)

    print("KERNEL_OK")
</pallas_src>

<mosaic_0001>
module attributes {stable_mosaic.version = 11 : i64} {
  func.func @kernel(%arg0: i32, %arg1: memref<128x32xf32, #tpu.memory_space<vmem>>, %arg2: memref<4x32xf32, #tpu.memory_space<vmem>>, %arg3: memref<1x4xf32, #tpu.memory_space<vmem>>, %arg4: memref<4x32xf32, #tpu.memory_space<vmem>>, %arg5: memref<1x32xf32, #tpu.memory_space<vmem>>, %arg6: memref<3x4xf32, #tpu.memory_space<vmem>>, %arg7: memref<128x32xf32, #tpu.memory_space<vmem>>, %arg8: memref<1x128xi32, #tpu.memory_space<vmem>>) attributes {dimension_semantics = [#tpu.dimension_semantics<parallel>], iteration_bounds = array<i64: 1>, scalar_prefetch = 0 : i64, scratch_operands = 0 : i64, tpu.core_type = #tpu.core_type<tc>, window_params = [{transform_indices = @transform_0, window_bounds = array<i64: 128, 32>}, {pipeline_mode = #tpu.pipeline_mode<synchronous>, transform_indices = @transform_1, window_bounds = array<i64: 4, 32>}, {pipeline_mode = #tpu.pipeline_mode<synchronous>, transform_indices = @transform_2, window_bounds = array<i64: 1, 4>}, {pipeline_mode = #tpu.pipeline_mode<synchronous>, transform_indices = @transform_3, window_bounds = array<i64: 4, 32>}, {pipeline_mode = #tpu.pipeline_mode<synchronous>, transform_indices = @transform_4, window_bounds = array<i64: 1, 32>}, {pipeline_mode = #tpu.pipeline_mode<synchronous>, transform_indices = @transform_5, window_bounds = array<i64: 3, 4>}, {transform_indices = @transform_6, window_bounds = array<i64: 128, 32>}, {transform_indices = @transform_7, window_bounds = array<i64: 1, 128>}]} {
    %c0 = arith.constant 0 : index
    %c0_0 = arith.constant 0 : index
    %0 = vector.load %arg1[%c0, %c0_0] : memref<128x32xf32, #tpu.memory_space<vmem>>, vector<128x32xf32>
    %c0_1 = arith.constant 0 : index
    %c0_2 = arith.constant 0 : index
    %1 = vector.load %arg2[%c0_1, %c0_2] : memref<4x32xf32, #tpu.memory_space<vmem>>, vector<4x32xf32>
    %cst = arith.constant dense<0.000000e+00> : vector<128x4xf32>
    %2 = tpu.matmul %0, %1, %cst {dimension_numbers = #tpu.dot_dimension_numbers<[1], [1], [0], [0], [0, 0, 1, 0], [], []>, precision = #tpu.contract_precision<fp32>} : vector<128x32xf32>, vector<4x32xf32>, vector<128x4xf32> -> vector<128x4xf32>
    %c0_3 = arith.constant 0 : index
    %c0_4 = arith.constant 0 : index
    %3 = vector.load %arg3[%c0_3, %c0_4] : memref<1x4xf32, #tpu.memory_space<vmem>>, vector<1x4xf32>
    %4 = vector.broadcast %3 : vector<1x4xf32> to vector<128x4xf32>
    %5 = arith.addf %2, %4 : vector<128x4xf32>
    %c0_5 = arith.constant 0 : index
    %c0_6 = arith.constant 0 : index
    %6 = vector.load %arg6[%c0_5, %c0_6] : memref<3x4xf32, #tpu.memory_space<vmem>>, vector<3x4xf32>
    %7 = vector.extract_strided_slice %6 {offsets = [0, 0], sizes = [1, 4], strides = [1, 1]} : vector<3x4xf32> to vector<1x4xf32>
    %8 = vector.extract_strided_slice %6 {offsets = [1, 0], sizes = [1, 4], strides = [1, 1]} : vector<3x4xf32> to vector<1x4xf32>
    %9 = vector.extract_strided_slice %6 {offsets = [2, 0], sizes = [1, 4], strides = [1, 1]} : vector<3x4xf32> to vector<1x4xf32>
    %10 = math.tanh %5 : vector<128x4xf32>
    %11 = vector.broadcast %7 : vector<1x4xf32> to vector<128x4xf32>
    %12 = arith.mulf %10, %11 : vector<128x4xf32>
    %13 = vector.broadcast %8 : vector<1x4xf32> to vector<128x4xf32>
    %14 = arith.subf %12, %13 : vector<128x4xf32>
    %15 = math.roundeven %14 : vector<128x4xf32>
    %c0_7 = arith.constant 0 : index
    %c0_8 = arith.constant 0 : index
    %16 = vector.load %arg4[%c0_7, %c0_8] : memref<4x32xf32, #tpu.memory_space<vmem>>, vector<4x32xf32>
    %cst_9 = arith.constant dense<0.000000e+00> : vector<128x32xf32>
    %17 = tpu.matmul %15, %16, %cst_9 {dimension_numbers = #tpu.dot_dimension_numbers<[1], [0], [0], [1], [0, 0, 1, 1], [], []>, precision = #tpu.contract_precision<fp32>} : vector<128x4xf32>, vector<4x32xf32>, vector<128x32xf32> -> vector<128x32xf32>
    %c0_10 = arith.constant 0 : index
    %c0_11 = arith.constant 0 : index
    %18 = vector.load %arg5[%c0_10, %c0_11] : memref<1x32xf32, #tpu.memory_space<vmem>>, vector<1x32xf32>
    %19 = vector.broadcast %18 : vector<1x32xf32> to vector<128x32xf32>
    %20 = arith.addf %17, %19 : vector<128x32xf32>
    %c0_12 = arith.constant 0 : index
    %c0_13 = arith.constant 0 : index
    %21 = vector.load %arg7[%c0_12, %c0_13] : memref<128x32xf32, #tpu.memory_space<vmem>>, vector<128x32xf32>
    tpu.vector_store %arg7[%c0_12, %c0_13], %20 {strides = array<i32>} : memref<128x32xf32, #tpu.memory_space<vmem>>, vector<128x32xf32>,
    %cst_14 = arith.constant dense<0.000000e+00> : vector<1x128xf32>
    %22 = tpu.matmul %9, %15, %cst_14 {dimension_numbers = #tpu.dot_dimension_numbers<[1], [1], [0], [0], [0, 0, 1, 0], [], []>, precision = #tpu.contract_precision<fp32>} : vector<1x4xf32>, vector<128x4xf32>, vector<1x128xf32> -> vector<1x128xf32>
    %cst_15 = arith.constant 5.000000e+02 : f32
    %23 = vector.broadcast %cst_15 : f32 to vector<1x128xf32>
    %24 = arith.addf %22, %23 : vector<1x128xf32>
    %25 = math.roundeven %24 : vector<1x128xf32>
    %26 = arith.fptosi %25 : vector<1x128xf32> to vector<1x128xi32>
    %c0_16 = arith.constant 0 : index
    %c0_17 = arith.constant 0 : index
    %27 = vector.load %arg8[%c0_16, %c0_17] : memref<1x128xi32, #tpu.memory_space<vmem>>, vector<1x128xi32>
    tpu.vector_store %arg8[%c0_16, %c0_17], %26 {strides = array<i32>} : memref<1x128xi32, #tpu.memory_space<vmem>>, vector<1x128xi32>,
    return
  }
  func.func @transform_0(%arg0: i32) -> (i32, i32) {
    %c0_i32 = arith.constant 0 : i32
    %c0_i32_0 = arith.constant 0 : i32
    return %arg0, %c0_i32 : i32, i32
  }
  func.func @transform_1(%arg0: i32) -> (i32, i32) {
    %c0_i32 = arith.constant 0 : i32
    %c0_i32_0 = arith.constant 0 : i32
    %c0_i32_1 = arith.constant 0 : i32
    return %c0_i32, %c0_i32_0 : i32, i32
  }
  func.func @transform_2(%arg0: i32) -> (i32, i32) {
    %c0_i32 = arith.constant 0 : i32
    %c0_i32_0 = arith.constant 0 : i32
    %c0_i32_1 = arith.constant 0 : i32
    return %c0_i32, %c0_i32_0 : i32, i32
  }
  func.func @transform_3(%arg0: i32) -> (i32, i32) {
    %c0_i32 = arith.constant 0 : i32
    %c0_i32_0 = arith.constant 0 : i32
    %c0_i32_1 = arith.constant 0 : i32
    return %c0_i32, %c0_i32_0 : i32, i32
  }
  func.func @transform_4(%arg0: i32) -> (i32, i32) {
    %c0_i32 = arith.constant 0 : i32
    %c0_i32_0 = arith.constant 0 : i32
    %c0_i32_1 = arith.constant 0 : i32
    return %c0_i32, %c0_i32_0 : i32, i32
  }
  func.func @transform_5(%arg0: i32) -> (i32, i32) {
    %c0_i32 = arith.constant 0 : i32
    %c0_i32_0 = arith.constant 0 : i32
    %c0_i32_1 = arith.constant 0 : i32
    return %c0_i32, %c0_i32_0 : i32, i32
  }
  func.func @transform_6(%arg0: i32) -> (i32, i32) {
    %c0_i32 = arith.constant 0 : i32
    %c0_i32_0 = arith.constant 0 : i32
    return %arg0, %c0_i32 : i32, i32
  }
  func.func @transform_7(%arg0: i32) -> (i32, i32) {
    %c0_i32 = arith.constant 0 : i32
    %c0_i32_0 = arith.constant 0 : i32
    return %c0_i32, %arg0 : i32, i32
  }
}

</mosaic_0001>

<bundles_post_ra>
// kernel: fsq_distribution_forward.1
= control target key start
LH: loop header
LB: loop body
LE: loop exit
PB: predicated region body
PF: predicated region fallthrough
CT: control target
= control target key end

     0   :  { %13 = vsyncpa [#allocation3], 0  ;;  %vm50_vm0 = vcmask 261120   ;;  %vm1323_vm1 = vcmask 1043456   ;;  %vm4359_vm2 = vmmov 0   ;;  %vm1274_vm3 = vcmask 31744   ;;  %s5354_s0 = inlined_call_operand.vmem [shape: f32[16,32], index: 0, kind: input, shape index: {}]   ;;  %s5355_s1 = inlined_call_operand.vmem [shape: f32[4,32], index: 1, kind: input, shape index: {}]   ;;  %s5356_s2 = inlined_call_operand.vmem [shape: f32[1,4], index: 2, kind: input, shape index: {}]   ;;  %s5357_s3 = inlined_call_operand.vmem [shape: f32[4,32], index: 3, kind: input, shape index: {}]   ;;  %s5358_s4 = inlined_call_operand.vmem [shape: f32[1,32], index: 4, kind: input, shape index: {}]   ;;  %s5359_s5 = inlined_call_operand.vmem [shape: f32[3,4], index: 5, kind: input, shape index: {}]   ;;  %s5360_s6 = inlined_call_operand.hbm [shape: f32[16,32], index: 6, kind: output, shape index: {0}]   ;;  %s5361_s7 = inlined_call_operand.vmem [shape: s32[1,16], index: 7, kind: output, shape index: {1}]  }
   0x1   :  { %v42_v0 = vld [vmem:[%s5355_s1] sm:$0xf]  ;;  %v27_v4 = vld [vmem:[%s5354_s0 + $0x8] sm:$0xff]  ;;  %v28_v5 = vld [vmem:[%s5354_s0 + $0x10] sm:$0xff] }
   0x2   :  { %v26_v1 = vld [vmem:[%s5354_s0] sm:$0xff]  ;;  %v100_v2 = vsel %vm50_vm0, %v42_v0, 0  ;;  %v29_v6 = vld [vmem:[%s5354_s0 + $0x18] sm:$0xff]  ;;  %v55_v9 = vsel %vm50_vm0, %v27_v4, 0  ;;  %v58_v10 = vsel %vm50_vm0, %v28_v5, 0  ;;  %v31_v12 = vld [vmem:[%s5354_s0 + $0x28] sm:$0xff] }
   0x3   :  { %v52_v3 = vsel %vm50_vm0, %v26_v1, 0  ;;  %v4421_v7 = vand.u32 4294901760, %v100_v2  ;;  %v30_v11 = vld [vmem:[%s5354_s0 + $0x20] sm:$0xff]  ;;  %v4433_v13 = vand.u32 4294901760, %v55_v9  ;;  %v4435_v14 = vand.u32 4294901760, %v58_v10  ;;  %v32_v17 = vld [vmem:[%s5354_s0 + $0x30] sm:$0xff] }
   0x4   :  { %v4423_v8 = vand.u32 4294901760, %v52_v3  ;;  %v61_v15 = vsel %vm50_vm0, %v29_v6, 0  ;;  %v64_v16 = vsel %vm50_vm0, %v30_v11, 0  ;;  %v67_v24 = vsel %vm50_vm0, %v31_v12, 0  ;;  %v33_v42 = vld [vmem:[%s5354_s0 + $0x38] sm:$0xff]  ;;  %v34_v43 = vld [vmem:[%s5354_s0 + $0x40] sm:$0xff] }
   0x5   :  { %3409 = vmatprep.subr.mxu0 %v4421_v7  ;;  %v4447_v19 = vsub.f32 %v100_v2, %v4421_v7  ;;  %v4449_v20 = vand.u32 4294901760, %v61_v15  ;;  %v4451_v21 = vand.u32 4294901760, %v64_v16  ;;  %v4455_v22 = vsub.f32 %v55_v9, %v4433_v13  ;;  %v35_v48 = vld [vmem:[%s5354_s0 + $0x48] sm:$0xff]  ;;  %v36_v49 = vld [vmem:[%s5354_s0 + $0x50] sm:$0xff]  ;;  %v37_v54 = vld [vmem:[%s5354_s0 + $0x58] sm:$0xff] }
   0x6   :  { %v4444_v18 = vsub.f32 %v52_v3, %v4423_v8  ;;  %3410 = vmatpush3.xpose.msra.mxu0 %v4421_v7  ;;  %v4458_v23 = vsub.f32 %v58_v10, %v4435_v14  ;;  %v70_v25 = vsel %vm50_vm0, %v32_v17, 0  ;;  %v4474_v32 = vand.u32 4294901760, %v67_v24  ;;  %v38_v55 = vld [vmem:[%s5354_s0 + $0x60] sm:$0xff]  ;;  %v39_v4 = vld [vmem:[%s5354_s0 + $0x68] sm:$0xff]  ;;  %v40_v5 = vld [vmem:[%s5354_s0 + $0x70] sm:$0xff] }
   0x7   :  { %v4464_v27 = vand.u32 4294901760, %v4447_v19  ;;  %v4467_v28 = vsub.f32 %v61_v15, %v4449_v20  ;;  %v4470_v29 = vsub.f32 %v64_v16, %v4451_v21  ;;  %v180_v30 = vand.u32 4294901760, %v4455_v22 }
   0x8   :  { %v170_v26 = vand.u32 4294901760, %v4444_v18  ;;  %v190_v31 = vand.u32 4294901760, %v4458_v23  ;;  %v4476_v33 = vand.u32 4294901760, %v70_v25  ;;  %v4492_v40 = vsub.f32 %v67_v24, %v4474_v32 }
   0x9   :  { %v332_v35 = vsub.f32 %v4447_v19, %v4464_v27  ;;  %v200_v36 = vand.u32 4294901760, %v4467_v28  ;;  %v210_v37 = vand.u32 4294901760, %v4470_v29  ;;  %v181_v38 = vsub.f32 %v4455_v22, %v180_v30 }
   0xa   :  { %v171_v34 = vsub.f32 %v4444_v18, %v170_v26  ;;  %v191_v39 = vsub.f32 %v4458_v23, %v190_v31  ;;  %v4495_v41 = vsub.f32 %v70_v25, %v4476_v33  ;;  %v220_v52 = vand.u32 4294901760, %v4492_v40 }
   0xb   :  { %v333_v45 = vand.u32 4294901760, %v332_v35  ;;  %v201_v46 = vsub.f32 %v4467_v28, %v200_v36  ;;  %v211_v47 = vsub.f32 %v4470_v29, %v210_v37  ;;  %v182_v50 = vand.u32 4294901760, %v181_v38 }
   0xc   :  { %v172_v44 = vand.u32 4294901760, %v171_v34  ;;  %v192_v51 = vand.u32 4294901760, %v191_v39  ;;  %v230_v53 = vand.u32 4294901760, %v4495_v41  ;;  %v73_v58 = vsel %vm50_vm0, %v33_v42, 0 }
   0xd   :  { %3435 = vmatprep.subr.mxu0 %v333_v45  ;;  %v202_v56 = vand.u32 4294901760, %v201_v46  ;;  %v212_v57 = vand.u32 4294901760, %v211_v47  ;;  %v76_v59 = vsel %vm50_vm0, %v34_v43, 0  ;;  %v221_v60 = vsub.f32 %v4492_v40, %v220_v52 }
   0xe   :  { %3411 = vmatprep.mubr.f32.mxu0 %v172_v44  ;;  %v231_v61 = vsub.f32 %v4495_v41, %v230_v53  ;;  %v4531_v62 = vand.u32 4294901760, %v73_v58  ;;  %v4533_v63 = vand.u32 4294901760, %v76_v59  ;;  %v79_v0 = vsel %vm50_vm0, %v35_v48, 0 }
   0xf   :  { %3412 = vmatmul.mubr.f32.vlgmr.msra.gmra.mrb[0].mxu0 %v182_v50  ;;  %v82_v1 = vsel %vm50_vm0, %v36_v49, 0  ;;  %v85_v2 = vsel %vm50_vm0, %v37_v54, 0  ;;  %v88_v3 = vsel %vm50_vm0, %v38_v55, 0  ;;  %v222_v6 = vand.u32 4294901760, %v221_v60  ;;  %v41_v50 = vld [vmem:[%s5354_s0 + $0x78] sm:$0xff] }
  0x10   :  { %3436 = vmatpush3.xpose.msra.mxu0 %v333_v45  ;;  %3414 = vmatprep.mubr.f32.mxu0 %v192_v51  ;;  %v232_v9 = vand.u32 4294901760, %v231_v61  ;;  %v4546_v10 = vsub.f32 %v73_v58, %v4531_v62  ;;  %v4549_v11 = vsub.f32 %v76_v59, %v4533_v63  ;;  %v4552_v12 = vand.u32 4294901760, %v79_v0 }
  0x11   :  { %3461 = vmatprep.subr.mxu0 %v4447_v19  ;;  %v4554_v15 = vand.u32 4294901760, %v82_v1  ;;  %v4556_v16 = vand.u32 4294901760, %v85_v2  ;;  %v4558_v17 = vand.u32 4294901760, %v88_v3  ;;  %v91_v34 = vsel %vm50_vm0, %v39_v4, 0 }
  0x12   :  { %v240_v24 = vand.u32 4294901760, %v4546_v10  ;;  %v250_v25 = vand.u32 4294901760, %v4549_v11  ;;  %v94_v35 = vsel %vm50_vm0, %v40_v5, 0  ;;  %v4565_v38 = vsub.f32 %v79_v0, %v4552_v12 }
  0x13   :  { %3415 = vmatmul.mubr.f32.gmra.mrb[2].mxu0 %v202_v56  ;;  %v4568_v39 = vsub.f32 %v82_v1, %v4554_v15  ;;  %v4571_v42 = vsub.f32 %v85_v2, %v4556_v16  ;;  %v4574_v43 = vsub.f32 %v88_v3, %v4558_v17  ;;  %v4582_v46 = vand.u32 4294901760, %v91_v34 }
  0x14   :  { %3417 = vmatprep.mubr.f32.mxu0 %v212_v57  ;;  %v241_v44 = vsub.f32 %v4546_v10, %v240_v24  ;;  %v251_v45 = vsub.f32 %v4549_v11, %v250_v25  ;;  %v4584_v47 = vand.u32 4294901760, %v94_v35  ;;  %v260_v48 = vand.u32 4294901760, %v4565_v38 }
  0x15   :  { %v270_v49 = vand.u32 4294901760, %v4568_v39  ;;  %v280_v54 = vand.u32 4294901760, %v4571_v42  ;;  %v290_v55 = vand.u32 4294901760, %v4574_v43  ;;  %v4594_v56 = vsub.f32 %v91_v34, %v4582_v46 }
  0x16   :  { %v242_v51 = vand.u32 4294901760, %v241_v44  ;;  %v252_v57 = vand.u32 4294901760, %v251_v45  ;;  %v261_v58 = vsub.f32 %v4565_v38, %v260_v48  ;;  %v4603_v60 = vsub.f32 %v94_v35, %v4584_v47 }
  0x17   :  { %3418 = vmatmul.mubr.f32.gmra.mrb[4].mxu0 %v222_v6  ;;  %v271_v59 = vsub.f32 %v4568_v39, %v270_v49  ;;  %v97_v61 = vsel %vm50_vm0, %v41_v50, 0  ;;  %v281_v1 = vsub.f32 %v4571_v42, %v280_v54  ;;  %v300_v2 = vand.u32 4294901760, %v4594_v56 }
  0x18   :  { %3420 = vmatprep.mubr.f32.mxu0 %v232_v9  ;;  %v262_v0 = vand.u32 4294901760, %v261_v58  ;;  %v4610_v3 = vand.u32 4294901760, %v97_v61  ;;  %v291_v5 = vsub.f32 %v4574_v43, %v290_v55  ;;  %v310_v6 = vand.u32 4294901760, %v4603_v60 }
  0x19   :  { %v272_v4 = vand.u32 4294901760, %v271_v59  ;;  %v282_v34 = vand.u32 4294901760, %v281_v1  ;;  %v301_v35 = vsub.f32 %v4594_v56, %v300_v2 }
  0x1a   :  { %v4617_v9 = vsub.f32 %v97_v61, %v4610_v3  ;;  %v292_v45 = vand.u32 4294901760, %v291_v5  ;;  %v311_v50 = vsub.f32 %v4603_v60, %v310_v6 }
  0x1b   :  { %3421 = vmatmul.mubr.f32.gmra.mrb[6].mxu0 %v242_v51  ;;  %v302_v51 = vand.u32 4294901760, %v301_v35 }
  0x1c   :  { %3423 = vmatprep.mubr.f32.mxu0 %v252_v57  ;;  %v320_v44 = vand.u32 4294901760, %v4617_v9  ;;  %v312_v58 = vand.u32 4294901760, %v311_v50 }
  0x1e   :  { %v321_v57 = vsub.f32 %v4617_v9, %v320_v44 }
  0x1f   :  { %3424 = vmatmul.mubr.f32.gmra.mrb[8].mxu0 %v262_v0 }
  0x20   :  { %3426 = vmatprep.mubr.f32.mxu0 %v272_v4  ;;  %v322_v59 = vand.u32 4294901760, %v321_v57 }
  0x23   :  { %3427 = vmatmul.mubr.f32.gmra.mrb[10].mxu0 %v282_v34 }
  0x24   :  { %3429 = vmatprep.mubr.f32.mxu0 %v292_v45 }
  0x27   :  { %3430 = vmatmul.mubr.f32.gmra.mrb[12].mxu0 %v302_v51 }
  0x28   :  { %3432 = vmatprep.mubr.f32.mxu0 %v312_v58 }
  0x2b   :  { %3433 = vmatmul.mubr.f32.gmra.mrb[14].mxu0 %v322_v59 }
  0x2c   :  { %3437 = vmatprep.mubr.f32.mxu0 %v4423_v8 }
  0x2f   :  { %3438 = vmatmul.mubr.f32.vlgmr.msra.gmra.mrb[0].mxu0 %v4433_v13 }
  0x30   :  { %3462 = vmatpush3.xpose.msra.mxu0 %v4447_v19  ;;  %3440 = vmatprep.mubr.f32.mxu0 %v4435_v14 }
  0x31   :  { %3487 = vmatprep.subr.mxu0 %v4421_v7 }
  0x33   :  { %3441 = vmatmul.mubr.f32.gmra.mrb[2].mxu0 %v4449_v20 }
  0x34   :  { %3443 = vmatprep.mubr.f32.mxu0 %v4451_v21 }
  0x37   :  { %3444 = vmatmul.mubr.f32.gmra.mrb[4].mxu0 %v4474_v32 }
  0x38   :  { %3446 = vmatprep.mubr.f32.mxu0 %v4476_v33 }
  0x3b   :  { %3447 = vmatmul.mubr.f32.gmra.mrb[6].mxu0 %v4531_v62 }
  0x3c   :  { %3449 = vmatprep.mubr.f32.mxu0 %v4533_v63 }
  0x3f   :  { %3450 = vmatmul.mubr.f32.gmra.mrb[8].mxu0 %v4552_v12 }
  0x40   :  { %3452 = vmatprep.mubr.f32.mxu0 %v4554_v15 }
  0x43   :  { %3453 = vmatmul.mubr.f32.gmra.mrb[10].mxu0 %v4556_v16 }
  0x44   :  { %3455 = vmatprep.mubr.f32.mxu0 %v4558_v17 }
  0x47   :  { %3456 = vmatmul.mubr.f32.gmra.mrb[12].mxu0 %v4582_v46 }
  0x48   :  { %3458 = vmatprep.mubr.f32.mxu0 %v4584_v47 }
  0x4b   :  { %3459 = vmatmul.mubr.f32.gmra.mrb[14].mxu0 %v4610_v3 }
  0x4c   :  { %3463 = vmatprep.mubr.f32.mxu0 %v4444_v18 }
  0x4f   :  { %3464 = vmatmul.mubr.f32.vlgmr.msra.gmra.mrb[0].mxu0 %v4455_v22  ;;  %v5362_v22 = vmov 0.0  }
  0x50   :  { %3488 = vmatpush3.xpose.msra.mxu0 %v4421_v7  ;;  %3466 = vmatprep.mubr.f32.mxu0 %v4458_v23  ;;  %v4756_v23 = vld [vmem:[%s5356_s2] ss:$0 sm:$0xff] }
  0x51   :  { %3513 = vmatprep.subr.mxu0 %v4464_v27 }
  0x53   :  { %3467 = vmatmul.mubr.f32.gmra.mrb[2].mxu0 %v4467_v28 }
  0x54   :  { %3469 = vmatprep.mubr.f32.mxu0 %v4470_v29 }
  0x57   :  { %3470 = vmatmul.mubr.f32.gmra.mrb[4].mxu0 %v4492_v40 }
  0x58   :  { %3472 = vmatprep.mubr.f32.mxu0 %v4495_v41  ;;  %v4765_v41 = vld [vmem:[%s5359_s5] sm:$0x7] }
  0x5b   :  { %3473 = vmatmul.mubr.f32.gmra.mrb[6].mxu0 %v4546_v10 }
  0x5c   :  { %3475 = vmatprep.mubr.f32.mxu0 %v4549_v11 }
  0x5f   :  { %3476 = vmatmul.mubr.f32.gmra.mrb[8].mxu0 %v4565_v38 }
  0x60   :  { %3478 = vmatprep.mubr.f32.mxu0 %v4568_v39 }
  0x63   :  { %3479 = vmatmul.mubr.f32.gmra.mrb[10].mxu0 %v4571_v42 }
  0x64   :  { %3481 = vmatprep.mubr.f32.mxu0 %v4574_v43 }
  0x67   :  { %3482 = vmatmul.mubr.f32.gmra.mrb[12].mxu0 %v4594_v56 }
  0x68   :  { %3484 = vmatprep.mubr.f32.mxu0 %v4603_v60 }
  0x6b   :  { %3485 = vmatmul.mubr.f32.gmra.mrb[14].mxu0 %v4617_v9 }
  0x6c   :  { %3489 = vmatprep.mubr.f32.mxu0 %v170_v26  ;;  %v1210_v26 = vlaneseq }
  0x6f   :  { %3490 = vmatmul.mubr.f32.vlgmr.msra.gmra.mrb[0].mxu0 %v180_v30  ;;  %v1211_v30 = vshrl.u32 %v1210_v26, 7 }
  0x70   :  { %3514 = vmatpush3.xpose.msra.mxu0 %v4464_v27  ;;  %3492 = vmatprep.mubr.f32.mxu0 %v190_v31 }
  0x71   :  { %3539 = vmatprep.subr.mxu0 %v4421_v7 }
  0x73   :  { %3493 = vmatmul.mubr.f32.gmra.mrb[2].mxu0 %v200_v36 }
  0x74   :  { %3495 = vmatprep.mubr.f32.mxu0 %v210_v37  ;;  %v1212_v37 = vsub.s32 0, %v1211_v30 }
  0x76   :  { %v4769_v10 = vrot.slane %v4765_v41, %v1212_v37 }
  0x77   :  { %3496 = vmatmul.mubr.f32.gmra.mrb[4].mxu0 %v220_v52  ;;  %v1232_v52 = vsub.s32 1, %v1211_v30 }
  0x78   :  { %3498 = vmatprep.mubr.f32.mxu0 %v230_v53 }
  0x7b   :  { %3499 = vmatmul.mubr.f32.gmra.mrb[6].mxu0 %v240_v24 }
  0x7c   :  { %3501 = vmatprep.mubr.f32.mxu0 %v250_v25 }
  0x7f   :  { %3502 = vmatmul.mubr.f32.gmra.mrb[8].mxu0 %v260_v48 }
  0x80   :  { %3504 = vmatprep.mubr.f32.mxu0 %v270_v49 }
  0x83   :  { %3505 = vmatmul.mubr.f32.gmra.mrb[10].mxu0 %v280_v54 }
  0x84   :  { %3507 = vmatprep.mubr.f32.mxu0 %v290_v55 }
  0x87   :  { %3508 = vmatmul.mubr.f32.gmra.mrb[12].mxu0 %v300_v2 }
  0x88   :  { %3510 = vmatprep.mubr.f32.mxu0 %v310_v6 }
  0x8b   :  { %3511 = vmatmul.mubr.f32.gmra.mrb[14].mxu0 %v320_v44 }
  0x8c   :  { %3515 = vmatprep.mubr.f32.mxu0 %v4423_v8 }
  0x8f   :  { %3516 = vmatmul.mubr.f32.vlgmr.msra.gmra.mrb[0].mxu0 %v4433_v13 }
  0x90   :  { %3540 = vmatpush3.xpose.msra.mxu0 %v4421_v7  ;;  %3518 = vmatprep.mubr.f32.mxu0 %v4435_v14  ;;  %v5364_v7 = vmov 0.0|0.0  }
  0x91   :  { %3931 = vmatprep.subr.bf16.mxu0 %v5364_v7 }
  0x93   :  { %3519 = vmatmul.mubr.f32.gmra.mrb[2].mxu0 %v4449_v20 }
  0x94   :  { %3521 = vmatprep.mubr.f32.mxu0 %v4451_v21 }
  0x97   :  { %3522 = vmatmul.mubr.f32.gmra.mrb[4].mxu0 %v4474_v32 }
  0x98   :  { %3524 = vmatprep.mubr.f32.mxu0 %v4476_v33 }
  0x9b   :  { %3525 = vmatmul.mubr.f32.gmra.mrb[6].mxu0 %v4531_v62 }
  0x9c   :  { %3527 = vmatprep.mubr.f32.mxu0 %v4533_v63 }
  0x9f   :  { %3528 = vmatmul.mubr.f32.gmra.mrb[8].mxu0 %v4552_v12 }
  0xa0   :  { %3530 = vmatprep.mubr.f32.mxu0 %v4554_v15 }
  0xa3   :  { %3531 = vmatmul.mubr.f32.gmra.mrb[10].mxu0 %v4556_v16 }
  0xa4   :  { %3533 = vmatprep.mubr.f32.mxu0 %v4558_v17 }
  0xa7   :  { %3534 = vmatmul.mubr.f32.gmra.mrb[12].mxu0 %v4582_v46 }
  0xa8   :  { %3536 = vmatprep.mubr.f32.mxu0 %v4584_v47 }
  0xab   :  { %3537 = vmatmul.mubr.f32.gmra.mrb[14].mxu0 %v4610_v3 }
  0xac   :  { %3541 = vmatprep.mubr.f32.mxu0 %v4423_v8  ;;  %v1266_v8 = vld [vmem:[%s5357_s3] sm:$0xf] }
  0xaf   :  { %3542 = vmatmul.mubr.f32.vlgmr.msra.gmra.mrb[0].mxu0 %v4433_v13  ;;  %v1325_v13 = vsel %vm1323_vm1, %v1266_v8, 0 }
  0xb0   :  { %3544 = vmatprep.mubr.f32.mxu0 %v4435_v14  ;;  %v4736_v14 = vand.u32 4294901760, %v1325_v13 }
  0xb2   :  { %3565 = vmatprep.subr.mxu1 %v4736_v14  ;;  %v4741_v18 = vsub.f32 %v1325_v13, %v4736_v14 }
  0xb3   :  { %3545 = vmatmul.mubr.f32.gmra.mrb[2].mxu0 %v4449_v20  ;;  %3566 = vmatpush3.msra.mxu1 %v4736_v14 }
  0xb4   :  { %3547 = vmatprep.mubr.f32.mxu0 %v4451_v21  ;;  %v4744_v19 = vand.u32 4294901760, %v4741_v18 }
  0xb6   :  { %v1557_v20 = vsub.f32 %v4741_v18, %v4744_v19 }
  0xb7   :  { %3548 = vmatmul.mubr.f32.gmra.mrb[4].mxu0 %v4474_v32 }
  0xb8   :  { %3550 = vmatprep.mubr.f32.mxu0 %v4476_v33  ;;  %v4748_v21 = vand.u32 4294901760, %v1557_v20 }
  0xba   :  { %3591 = vmatprep.subr.mxu1 %v4748_v21 }
  0xbb   :  { %3551 = vmatmul.mubr.f32.gmra.mrb[6].mxu0 %v4531_v62 }
  0xbc   :  { %3553 = vmatprep.mubr.f32.mxu0 %v4533_v63 }
  0xbf   :  { %3554 = vmatmul.mubr.f32.gmra.mrb[8].mxu0 %v4552_v12  ;;  %v4773_v12 = vrot.slane %v4765_v41, %v1232_v52 }
  0xc0   :  { %3556 = vmatprep.mubr.f32.mxu0 %v4554_v15 }
  0xc3   :  { %3557 = vmatmul.mubr.f32.gmra.mrb[10].mxu0 %v4556_v16 }
  0xc4   :  { %3559 = vmatprep.mubr.f32.mxu0 %v4558_v17 }
  0xc7   :  { %3560 = vmatmul.mubr.f32.gmra.mrb[12].mxu0 %v4582_v46 }
  0xc8   :  { %3562 = vmatprep.mubr.f32.mxu0 %v4584_v47 }
  0xcb   :  { %3563 = vmatmul.mubr.f32.gmra.mrb[14].mxu0 %v4610_v3 }
  0xcc   :  { %3753 = vmatprep.mubr.msk.f32.mxu0 %vm4359_vm2, %v5362_v22 }
 0x182   :  { %v3543_v27 = vpop.f32.mrb[0].mxu0 }
 0x183   :  { %v4075_v28 = vadd.f32 %v3543_v27, %v4756_v23  ;;  %v1099_v29 = vpop.f32.mrb[1].mxu0 }
 0x184   :  { %v4076_v31 = vadd.f32 %v4756_v23, %v1099_v29 }
 0x185   :  { %4302 = vtanh.f32 %v4075_v28 }
 0x186   :  { %4304 = vtanh.f32 %v4076_v31  ;;  %v3546_v32 = vpop.f32.mrb[2].mxu0 }
 0x187   :  { %v4077_v33 = vadd.f32 %v3546_v32, %v4756_v23  ;;  %v1111_v36 = vpop.f32.mrb[3].mxu0 }
 0x188   :  { %v4078_v40 = vadd.f32 %v4756_v23, %v1111_v36 }
 0x189   :  { %4306 = vtanh.f32 %v4077_v33 }
 0x18a   :  { %4308 = vtanh.f32 %v4078_v40  ;;  %v3549_v53 = vpop.f32.mrb[4].mxu0 }
 0x18b   :  { %v4079_v62 = vadd.f32 %v3549_v53, %v4756_v23  ;;  %v1123_v63 = vpop.f32.mrb[5].mxu0 }
 0x18c   :  { %v4080_v11 = vadd.f32 %v4756_v23, %v1123_v63 }
 0x18d   :  { %4310 = vtanh.f32 %v4079_v62 }
 0x18e   :  { %4312 = vtanh.f32 %v4080_v11  ;;  %v3552_v15 = vpop.f32.mrb[6].mxu0 }
 0x18f   :  { %v4303_v16 = vpop.eup %4302  ;;  %v4081_v17 = vadd.f32 %v3552_v15, %v4756_v23  ;;  %v1135_v24 = vpop.f32.mrb[7].mxu0 }
 0x190   :  { %v4305_v25 = vpop.eup %4304  ;;  %v1215_v38 = vmul.f32 %v4303_v16, %v4769_v10  ;;  %v4082_v39 = vadd.f32 %v4756_v23, %v1135_v24 }
 0x191   :  { %v1214_v42 = vmul.f32 %v4305_v25, %v4769_v10  ;;  %4314 = vtanh.f32 %v4081_v17 }
 0x192   :  { %v1235_v43 = vsub.f32 %v1215_v38, %v4773_v12  ;;  %4316 = vtanh.f32 %v4082_v39  ;;  %v3555_v46 = vpop.f32.mrb[8].mxu0 }
 0x193   :  { %v4307_v47 = vpop.eup %4306  ;;  %v1234_v48 = vsub.f32 %v1214_v42, %v4773_v12  ;;  %v4083_v49 = vadd.f32 %v3555_v46, %v4756_v23  ;;  %v1147_v54 = vpop.f32.mrb[9].mxu0 }
 0x194   :  { %v4309_v55 = vpop.eup %4308  ;;  %v4278_v56 = vround.rtne.f32 %v1235_v43  ;;  %v1217_v60 = vmul.f32 %v4307_v47, %v4769_v10  ;;  %v4084_v61 = vadd.f32 %v4756_v23, %v1147_v54 }
 0x195   :  { %v4277_v0 = vround.rtne.f32 %v1234_v48  ;;  %v1216_v1 = vmul.f32 %v4309_v55, %v4769_v10  ;;  %4318 = vtanh.f32 %v4083_v49 }
 0x196   :  { %v1279_v2 = vsel %vm1274_vm3, %v4278_v56, 0  ;;  %v1237_v3 = vsub.f32 %v1217_v60, %v4773_v12  ;;  %4320 = vtanh.f32 %v4084_v61  ;;  %v3558_v4 = vpop.f32.mrb[10].mxu0 }
 0x197   :  { %v4311_v5 = vpop.eup %4310  ;;  %v4787_v6 = vand.u32 4294901760, %v1279_v2  ;;  %v1276_v9 = vsel %vm1274_vm3, %v4277_v0, 0  ;;  %v1236_v34 = vsub.f32 %v1216_v1, %v4773_v12  ;;  %v4085_v35 = vadd.f32 %v3558_v4, %v4756_v23  ;;  %v1159_v44 = vpop.f32.mrb[11].mxu0 }
 0x198   :  { %v4313_v45 = vpop.eup %4312  ;;  %v4792_v50 = vand.u32 4294901760, %v1276_v9  ;;  %v4280_v51 = vround.rtne.f32 %v1237_v3  ;;  %v1219_v57 = vmul.f32 %v4311_v5, %v4769_v10  ;;  %v4086_v58 = vadd.f32 %v4756_v23, %v1159_v44 }
 0x199   :  { %v4279_v59 = vround.rtne.f32 %v1236_v34  ;;  %v1218_v8 = vmul.f32 %v4313_v45, %v4769_v10  ;;  %4322 = vtanh.f32 %v4085_v35  ;;  %v4803_v27 = vsub.f32 %v1279_v2, %v4787_v6 }
 0x19a   :  { %v1285_v13 = vsel %vm1274_vm3, %v4280_v51, 0  ;;  %4324 = vtanh.f32 %v4086_v58  ;;  %v3561_v20 = vpop.f32.mrb[12].mxu0  ;;  %v4800_v26 = vpack.c.bf16 %v4787_v6, %v4792_v50  ;;  %v1239_v40 = vsub.f32 %v1219_v57, %v4773_v12 }
 0x19b   :  { %v4315_v28 = vpop.eup %4314  ;;  %v1282_v29 = vsel %vm1274_vm3, %v4279_v59, 0  ;;  %v1238_v30 = vsub.f32 %v1218_v8, %v4773_v12  ;;  %v4087_v31 = vadd.f32 %v3561_v20, %v4756_v23  ;;  %v1171_v32 = vpop.f32.mrb[13].mxu0  ;;  %v4808_v36 = vand.u32 4294901760, %v1285_v13 }
 0x19c   :  { %5402 = vst [vmem:[#allocation5_spill] sm:$0xff] %v4800_v26  ;;  %v4317_v33 = vpop.eup %4316  ;;  %v4810_v37 = vand.u32 4294901760, %v1282_v29  ;;  %v4088_v52 = vadd.f32 %v4756_v23, %v1171_v32  ;;  %3933 = vmatpush3.bf16.xpose.msra.mxu0 %v4800_v26  ;;  %v1221_v53 = vmul.f32 %v4315_v28, %v4769_v10  ;;  %v4818_v63 = vsub.f32 %v1276_v9, %v4792_v50 }
 0x19d   :  { %v1220_v62 = vmul.f32 %v4317_v33, %v4769_v10  ;;  %4326 = vtanh.f32 %v4087_v31  ;;  %3934 = vmatprep.subr.bf16.mxu0 %v5364_v7  ;;  %v4281_v11 = vround.rtne.f32 %v1238_v30  ;;  %v4822_v16 = vand.u32 4294901760, %v4803_v27 }
 0x19e   :  { %4328 = vtanh.f32 %v4088_v52  ;;  %v3564_v15 = vpop.f32.mrb[14].mxu0  ;;  %v4827_v39 = vand.u32 4294901760, %v4818_v63  ;;  %v4830_v42 = vsub.f32 %v1282_v29, %v4810_v37  ;;  %v4282_v46 = vround.rtne.f32 %v1239_v40 }
 0x19f   :  { %v4319_v17 = vpop.eup %4318  ;;  %v1240_v24 = vsub.f32 %v1220_v62, %v4773_v12  ;;  %v4089_v25 = vadd.f32 %v3564_v15, %v4756_v23  ;;  %v1183_v38 = vpop.f32.mrb[15].mxu0  ;;  %v1406_v49 = vsub.f32 %v4803_v27, %v4822_v16  ;;  %v1241_v54 = vsub.f32 %v1221_v53, %v4773_v12 }
 0x1a0   :  { %v4321_v43 = vpop.eup %4320  ;;  %v1223_v47 = vmul.f32 %v4319_v17, %v4769_v10  ;;  %v4090_v48 = vadd.f32 %v4756_v23, %v1183_v38  ;;  %v1396_v55 = vsub.f32 %v4818_v63, %v4827_v39  ;;  %v4841_v56 = vpack.c.bf16 %v4808_v36, %v4810_v37 }
 0x1a1   :  { %4330 = vtanh.f32 %v4089_v25  ;;  %v4283_v60 = vround.rtne.f32 %v1240_v24  ;;  %v1222_v61 = vmul.f32 %v4321_v43, %v4769_v10  ;;  %v4845_v0 = vand.u32 4294901760, %v4830_v42 }
 0x1a2   :  { %5403 = vst [vmem:[#allocation6_spill] sm:$0xff] %v4841_v56  ;;  %4332 = vtanh.f32 %v4090_v48  ;;  %v1243_v1 = vsub.f32 %v1223_v47, %v4773_v12  ;;  %v4848_v2 = vand.u32 4294901760, %v1396_v55  ;;  %v4851_v3 = vsub.f32 %v1285_v13, %v4808_v36 }
 0x1a3   :  { %v4323_v23 = vpop.eup %4322  ;;  %v1288_v4 = vsel %vm1274_vm3, %v4281_v11, 0  ;;  %v4855_v34 = vand.u32 4294901760, %v1406_v49  ;;  %v1416_v35 = vsub.f32 %v4830_v42, %v4845_v0  ;;  %v4284_v45 = vround.rtne.f32 %v1241_v54 }
 0x1a4   :  { %v4325_v5 = vpop.eup %4324  ;;  %v1225_v9 = vmul.f32 %v4323_v23, %v4769_v10  ;;  %3936 = vmatpush3.bf16.xpose.msra.mxu0 %v4841_v56  ;;  %v4860_v44 = vand.u32 4294901760, %v1288_v4  ;;  %3567 = vmatprep.mubr.f32.mxu1 %v4848_v2  ;;  %v4865_v57 = vand.u32 4294901760, %v4851_v3  ;;  %v1242_v58 = vsub.f32 %v1222_v61, %v4773_v12 }
 0x1a5   :  { %v1224_v51 = vmul.f32 %v4325_v5, %v4769_v10  ;;  %3937 = vmatprep.subr.bf16.mxu0 %v5364_v7  ;;  %3568 = vmatmul.mubr.f32.vlgmr.msra.gmra.mrb[0].mxu1 %v4855_v34  ;;  %v4870_v59 = vand.u32 4294901760, %v1416_v35  ;;  %v1291_v13 = vsel %vm1274_vm3, %v4282_v46, 0  ;;  %v1294_v31 = vsel %vm1274_vm3, %v4283_v60, 0 }
 0x1a6   :  { %v4873_v8 = vsub.f32 %v1288_v4, %v4860_v44  ;;  %v1245_v28 = vsub.f32 %v1225_v9, %v4773_v12  ;;  %3592 = vmatpush3.msra.mxu1 %v4748_v21  ;;  %v1426_v29 = vsub.f32 %v4851_v3, %v4865_v57  ;;  %v4880_v30 = vand.u32 4294901760, %v1291_v13 }
 0x1a7   :  { %v4327_v20 = vpop.eup %4326  ;;  %v4286_v33 = vround.rtne.f32 %v1243_v1  ;;  %3570 = vmatprep.mubr.f32.mxu1 %v4870_v59  ;;  %v4888_v53 = vand.u32 4294901760, %v1294_v31  ;;  %3617 = vmatprep.subr.mxu1 %v4741_v18  ;;  %v1244_v21 = vsub.f32 %v1224_v51, %v4773_v12  ;;  %v4285_v17 = vround.rtne.f32 %v1242_v58 }
 0x1a8   :  { %v4329_v32 = vpop.eup %4328  ;;  %v1227_v40 = vmul.f32 %v4327_v20, %v4769_v10  ;;  %v4886_v52 = vand.u32 4294901760, %v4873_v8  ;;  %v4893_v11 = vand.u32 4294901760, %v1426_v29  ;;  %v4896_v15 = vsub.f32 %v1291_v13, %v4880_v30 }
 0x1a9   :  { %5404 = vst [vmem:[#allocation7_spill] sm:$0xff] %v4888_v53  ;;  %v1226_v62 = vmul.f32 %v4329_v32, %v4769_v10  ;;  %v4902_v25 = vpack.c.bf16 %v4880_v30, %v4860_v44  ;;  %v4905_v38 = vsub.f32 %v1294_v31, %v4888_v53  ;;  %v4288_v46 = vround.rtne.f32 %v1245_v28 }
 0x1aa   :  { %v1436_v24 = vsub.f32 %v4873_v8, %v4886_v52  ;;  %3571 = vmatmul.mubr.f32.gmra.mrb[2].mxu1 %v4893_v11  ;;  %v4910_v48 = vand.u32 4294901760, %v4896_v15  ;;  %v1297_v49 = vsel %vm1274_vm3, %v4284_v45, 0  ;;  %v1247_v55 = vsub.f32 %v1227_v40, %v4773_v12 }
 0x1ab   :  { %5405 = vst [vmem:[#allocation8_spill] sm:$0xff] %v4902_v25  ;;  %v4331_v43 = vpop.eup %4330  ;;  %v1246_v47 = vsub.f32 %v1226_v62, %v4773_v12  ;;  %v4919_v23 = vand.u32 4294901760, %v4905_v38  ;;  %v4287_v1 = vround.rtne.f32 %v1244_v21  ;;  %v4924_v9 = vand.u32 4294901760, %v1297_v49 }
 0x1ac   :  { %5406 = vst [vmem:[#allocation9_spill] sm:$0xff] %v4910_v48  ;;  %v4333_v54 = vpop.eup %4332  ;;  %v1229_v60 = vmul.f32 %v4331_v43, %v4769_v10  ;;  %v4915_v61 = vand.u32 4294901760, %v1436_v24  ;;  %3939 = vmatpush3.bf16.xpose.msra.mxu0 %v4902_v25  ;;  %v1446_v5 = vsub.f32 %v4896_v15, %v4910_v48  ;;  %v1300_v51 = vsel %vm1274_vm3, %v4285_v17, 0 }
 0x1ad   :  { %5407 = vst [vmem:[#allocation10_spill] sm:$0xff] %v4919_v23  ;;  %v1228_v4 = vmul.f32 %v4333_v54, %v4769_v10  ;;  %3940 = vmatprep.subr.bf16.mxu0 %v5364_v7  ;;  %v4289_v35 = vround.rtne.f32 %v1246_v47  ;;  %v1456_v45 = vsub.f32 %v4905_v38, %v4919_v23  ;;  %v1303_v58 = vsel %vm1274_vm3, %v4286_v33, 0 }
 0x1ae   :  { %3573 = vmatprep.mubr.f32.mxu1 %v4915_v61  ;;  %v4933_v10 = vand.u32 4294901760, %v1446_v5  ;;  %v4936_v20 = vsub.f32 %v1297_v49, %v4924_v9  ;;  %v4938_v28 = vand.u32 4294901760, %v1300_v51  ;;  %v4290_v29 = vround.rtne.f32 %v1247_v55 }
 0x1af   :  { %v1248_v13 = vsub.f32 %v1228_v4, %v4773_v12  ;;  %v1249_v31 = vsub.f32 %v1229_v60, %v4773_v12  ;;  %v4941_v32 = vand.u32 4294901760, %v1456_v45  ;;  %v4943_v40 = vand.u32 4294901760, %v1303_v58 }
 0x1b0   :  { %3574 = vmatmul.mubr.f32.gmra.mrb[4].mxu1 %v4933_v10  ;;  %v4947_v33 = vand.u32 4294901760, %v4936_v20  ;;  %v4950_v62 = vsub.f32 %v1300_v51, %v4938_v28  ;;  %v4954_v17 = vpack.c.bf16 %v4924_v9, %v4888_v53  ;;  %v1306_v24 = vsel %vm1274_vm3, %v4287_v1, 0 }
 0x1b1   :  { %v4291_v21 = vround.rtne.f32 %v1248_v13  ;;  %3576 = vmatprep.mubr.f32.mxu1 %v4941_v32  ;;  %v4958_v12 = vsub.f32 %v1303_v58, %v4943_v40  ;;  %v1309_v43 = vsel %vm1274_vm3, %v4288_v46, 0  ;;  %v1312_v47 = vsel %vm1274_vm3, %v4289_v35, 0 }
 0x1b2   :  { %5408 = vst [vmem:[#allocation11_spill] sm:$0xff] %v4947_v33  ;;  %5409 = vst [vmem:[#allocation12_spill] sm:$0xff] %v4954_v17  ;;  %v1466_v49 = vsub.f32 %v4936_v20, %v4947_v33  ;;  %v4966_v54 = vand.u32 4294901760, %v4950_v62  ;;  %v4968_v55 = vand.u32 4294901760, %v1306_v24  ;;  %v4970_v60 = vand.u32 4294901760, %v1309_v43 }
 0x1b3   :  { %v4292_v4 = vround.rtne.f32 %v1249_v31  ;;  %v4973_v5 = vand.u32 4294901760, %v4958_v12  ;;  %v4976_v1 = vand.u32 4294901760, %v1312_v47  ;;  %v1315_v46 = vsel %vm1274_vm3, %v4290_v29, 0 }
 0x1b4   :  { %5410 = vst [vmem:[#allocation13_spill] sm:$0xff] %v4966_v54  ;;  %3942 = vmatpush3.bf16.xpose.msra.mxu0 %v4954_v17  ;;  %v4979_v35 = vand.u32 4294901760, %v1466_v49  ;;  %v1476_v45 = vsub.f32 %v4950_v62, %v4966_v54  ;;  %v4984_v51 = vsub.f32 %v1306_v24, %v4968_v55  ;;  %v4987_v58 = vsub.f32 %v1309_v43, %v4970_v60 }
 0x1b5   :  { %5411 = vst [vmem:[#allocation14_spill] sm:$0xff] %v4973_v5  ;;  %3943 = vmatprep.subr.bf16.mxu0 %v5364_v7  ;;  %v1486_v13 = vsub.f32 %v4958_v12, %v4973_v5  ;;  %v4993_v31 = vsub.f32 %v1312_v47, %v4976_v1  ;;  %v4995_v29 = vand.u32 4294901760, %v1315_v46  ;;  %v1318_v49 = vsel %vm1274_vm3, %v4291_v21, 0 }
 0x1b6   :  { %3577 = vmatmul.mubr.f32.gmra.mrb[6].mxu1 %v4979_v35  ;;  %v4999_v22 = vand.u32 4294901760, %v1476_v45  ;;  %v5002_v24 = vand.u32 4294901760, %v4984_v51  ;;  %v5005_v43 = vand.u32 4294901760, %v4987_v58  ;;  %v5015_v25 = vand.u32 4294901760, %v1318_v49 }
 0x1b7   :  { %v5007_v7 = vand.u32 4294901760, %v1486_v13  ;;  %v5010_v17 = vand.u32 4294901760, %v4993_v31  ;;  %v5013_v47 = vsub.f32 %v1315_v46, %v4995_v29  ;;  %v5024_v13 = vpack.c.bf16 %v4943_v40, %v4938_v28 }
 0x1b8   :  { %5412 = vst [vmem:[#allocation15_spill] sm:$0xff] %v5002_v24  ;;  %5413 = vst [vmem:[#allocation16_spill] sm:$0xff] %v5005_v43  ;;  %3579 = vmatprep.mubr.f32.mxu1 %v4999_v22  ;;  %v1496_v21 = vsub.f32 %v4984_v51, %v5002_v24  ;;  %v1506_v45 = vsub.f32 %v4987_v58, %v5005_v43  ;;  %v1321_v56 = vsel %vm1274_vm3, %v4292_v4, 0 }
 0x1b9   :  { %5414 = vst [vmem:[#allocation17_spill] sm:$0xff] %v5010_v17  ;;  %5415 = vst [vmem:[#allocation18_spill] sm:$0xff] %v5024_v13  ;;  %v1516_v26 = vsub.f32 %v4993_v31, %v5010_v17  ;;  %v5032_v5 = vand.u32 4294901760, %v5013_v47  ;;  %v5035_v24 = vsub.f32 %v1318_v49, %v5015_v25  ;;  %v5042_v33 = vand.u32 4294901760, %v1321_v56 }
 0x1ba   :  { %3580 = vmatmul.mubr.f32.gmra.mrb[8].mxu1 %v5007_v7  ;;  %v5038_v43 = vand.u32 4294901760, %v1496_v21  ;;  %v5040_v54 = vand.u32 4294901760, %v1506_v45  ;;  %v5418_v45 = vmov 0.0|0.0  }
 0x1bb   :  { %5416 = vst [vmem:[#allocation19_spill] sm:$0xff] %v5032_v5  ;;  %v5044_v4 = vand.u32 4294901760, %v1516_v26  ;;  %v1526_v46 = vsub.f32 %v5013_v47, %v5032_v5  ;;  %v5050_v17 = vand.u32 4294901760, %v5035_v24  ;;  %v5056_v21 = vsub.f32 %v1321_v56, %v5042_v33 }
 0x1bc   :  { %3945 = vmatpush3.bf16.xpose.msra.mxu0 %v5024_v13  ;;  %3582 = vmatprep.mubr.f32.mxu1 %v5038_v43 }
 0x1bd   :  { %5417 = vst [vmem:[#allocation20_spill] sm:$0xff] %v5050_v17  ;;  %3946 = vmatprep.subr.bf16.mxu0 %v5418_v45  ;;  %v5059_v26 = vand.u32 4294901760, %v1526_v46  ;;  %v1536_v5 = vsub.f32 %v5035_v24, %v5050_v17  ;;  %v5065_v13 = vand.u32 4294901760, %v5056_v21  ;;  %v2435_v46 = vrot.slane %v4765_v41, 2 }
 0x1be   :  { %3583 = vmatmul.mubr.f32.gmra.mrb[10].mxu1 %v5040_v54  ;;  %v5077_v17 = vpack.c.bf16 %v4970_v60, %v4968_v55 }
 0x1bf   :  { %3585 = vmatprep.mubr.f32.mxu1 %v5044_v4  ;;  %v5070_v23 = vand.u32 4294901760, %v1536_v5  ;;  %v1546_v56 = vsub.f32 %v5056_v21, %v5065_v13  ;;  %v2436_v49 = vsel %vm1274_vm3, %v2435_v46, 0 }
 0x1c0   :  { %5419 = vst [vmem:[#allocation21_spill] sm:$0xff] %v5077_v17  ;;  %v5090_v41 = vand.u32 4294901760, %v2436_v49 }
 0x1c1   :  { %v5080_v48 = vand.u32 4294901760, %v1546_v56  ;;  %v5095_v56 = vpack.c.bf16 %v4995_v29, %v4976_v1 }
 0x1c2   :  { %3586 = vmatmul.mubr.f32.gmra.mrb[12].mxu1 %v5059_v26  ;;  %v5100_v5 = vsub.f32 %v2436_v49, %v5090_v41 }
 0x1c3   :  { %3588 = vmatprep.mubr.f32.mxu1 %v5070_v23  ;;  %5420 = vst [vmem:[#allocation22_spill] sm:$0xff] %v5095_v56 }
 0x1c4   :  { %3948 = vmatpush3.bf16.xpose.msra.mxu0 %v5077_v17  ;;  %v2521_v46 = vand.u32 4294901760, %v5100_v5  ;;  %v3956_v17 = vpack.c.bf16 %v4855_v34, %v4848_v2  ;;  %v3962_v2 = vpack.c.bf16 %v4933_v10, %v4915_v61  ;;  %v3965_v34 = vpack.c.bf16 %v4979_v35, %v4941_v32  ;;  %v5426_v61 = vld [vmem:[#allocation10_spill] sm:$0xff]  ;;  %v5428_v10 = vld [vmem:[#allocation11_spill] sm:$0xff]  ;;  %v5429_v32 = vld [vmem:[#allocation13_spill] sm:$0xff] }
 0x1c5   :  { %3949 = vmatprep.subr.bf16.mxu0 %v5418_v45  ;;  %v5431_v35 = vld [vmem:[#allocation15_spill] sm:$0xff] }
 0x1c6   :  { %3589 = vmatmul.mubr.f32.gmra.mrb[14].mxu1 %v5080_v48  ;;  %v2522_v49 = vsub.f32 %v5100_v5, %v2521_v46 }
 0x1c7   :  { %3593 = vmatprep.mubr.f32.mxu1 %v4792_v50 }
 0x1ca   :  { %3594 = vmatmul.mubr.f32.vlgmr.msra.gmra.mrb[0].mxu1 %v4787_v6 }
 0x1cb   :  { %3618 = vmatpush3.msra.mxu1 %v4741_v18  ;;  %3596 = vmatprep.mubr.f32.mxu1 %v4810_v37  ;;  %v5111_v18 = vpack.c.bf16 %v5042_v33, %v5015_v25 }
 0x1cc   :  { %3951 = vmatpush3.bf16.xpose.msra.mxu0 %v5095_v56  ;;  %3643 = vmatprep.subr.mxu1 %v4736_v14  ;;  %v2523_v56 = vand.u32 4294901760, %v2522_v49  ;;  %v3959_v49 = vpack.c.bf16 %v4893_v11, %v4870_v59  ;;  %v5422_v59 = vpack.c.bf16 %v5007_v7, %v4999_v22  ;;  %v5423_v11 = vpack.c.bf16 %v5040_v54, %v5038_v43  ;;  %v5425_v22 = vld [vmem:[#allocation9_spill] sm:$0xff]  ;;  %v5434_v43 = vld [vmem:[#allocation19_spill] sm:$0xff] }
 0x1cd   :  { %3952 = vmatprep.subr.bf16.mxu0 %v5418_v45  ;;  %v5424_v7 = vpack.c.bf16 %v5059_v26, %v5044_v4  ;;  %v3980_v54 = vpack.c.bf16 %v4803_v27, %v4818_v63  ;;  %v3983_v4 = vpack.c.bf16 %v4851_v3, %v4830_v42 }
 0x1ce   :  { %3597 = vmatmul.mubr.f32.gmra.mrb[2].mxu1 %v4808_v36 }
 0x1cf   :  { %3599 = vmatprep.mubr.f32.mxu1 %v4860_v44 }
 0x1d2   :  { %3600 = vmatmul.mubr.f32.gmra.mrb[4].mxu1 %v4880_v30 }
 0x1d3   :  { %3602 = vmatprep.mubr.f32.mxu1 %v4888_v53  ;;  %v5421_v53 = vmov 0.0  }
 0x1d4   :  { %3954 = vmatpush3.bf16.xpose.msra.mxu0 %v5111_v18 }
 0x1d5   :  { %3955 = vmatprep.subr.bf16.mxu0 %v5418_v45 }
 0x1d6   :  { %3603 = vmatmul.mubr.f32.gmra.mrb[6].mxu1 %v4924_v9 }
 0x1d7   :  { %3605 = vmatprep.mubr.f32.mxu1 %v4938_v28 }
 0x1da   :  { %3606 = vmatmul.mubr.f32.gmra.mrb[8].mxu1 %v4943_v40 }
 0x1db   :  { %3608 = vmatprep.mubr.f32.mxu1 %v4968_v55  ;;  %3754 = vmatmul.mubr.f32.vlgmr.msra.gmra.mrb[16].mxu0 %v2523_v56 }
 0x1dc   :  { %3957 = vmatpush3.bf16.xpose.msra.mxu0 %v3956_v17  ;;  %3788 = vmatprep.mubr.msk.f32.mxu0 %vm4359_vm2, %v5421_v53  ;;  %v5430_v17 = vld [vmem:[#allocation14_spill] sm:$0xff] }
 0x1dd   :  { %3958 = vmatprep.subr.bf16.mxu0 %v5418_v45 }
 0x1de   :  { %3609 = vmatmul.mubr.f32.gmra.mrb[10].mxu1 %v4970_v60 }
 0x1df   :  { %3611 = vmatprep.mubr.f32.mxu1 %v4976_v1 }
 0x1e2   :  { %3612 = vmatmul.mubr.f32.gmra.mrb[12].mxu1 %v4995_v29 }
 0x1e3   :  { %3614 = vmatprep.mubr.f32.mxu1 %v5015_v25 }
 0x1e4   :  { %3960 = vmatpush3.bf16.xpose.msra.mxu0 %v3959_v49 }
 0x1e5   :  { %3961 = vmatprep.subr.bf16.mxu0 %v5418_v45 }
 0x1e6   :  { %3615 = vmatmul.mubr.f32.gmra.mrb[14].mxu1 %v5042_v33 }
 0x1e7   :  { %3619 = vmatprep.mubr.f32.mxu1 %v4818_v63  ;;  %v3986_v63 = vpack.c.bf16 %v4896_v15, %v4873_v8 }
 0x1ea   :  { %3620 = vmatmul.mubr.f32.vlgmr.msra.gmra.mrb[0].mxu1 %v4803_v27  ;;  %v5435_v27 = vld [vmem:[#allocation20_spill] sm:$0xff] }
 0x1eb   :  { %3644 = vmatpush3.msra.mxu1 %v4736_v14  ;;  %3622 = vmatprep.mubr.f32.mxu1 %v4830_v42  ;;  %v3989_v42 = vpack.c.bf16 %v4936_v20, %v4905_v38 }
 0x1ec   :  { %3963 = vmatpush3.bf16.xpose.msra.mxu0 %v3962_v2  ;;  %3669 = vmatprep.subr.mxu1 %v4744_v19 }
 0x1ed   :  { %3964 = vmatprep.subr.bf16.mxu0 %v5418_v45 }
 0x1ee   :  { %3623 = vmatmul.mubr.f32.gmra.mrb[2].mxu1 %v4851_v3  ;;  %v5436_v3 = vld [vmem:[#allocation7_spill] sm:$0xff] }
 0x1ef   :  { %3625 = vmatprep.mubr.f32.mxu1 %v4873_v8  ;;  %v3995_v8 = vpack.c.bf16 %v4987_v58, %v4984_v51 }
 0x1f2   :  { %3626 = vmatmul.mubr.f32.gmra.mrb[4].mxu1 %v4896_v15  ;;  %v3998_v15 = vpack.c.bf16 %v5013_v47, %v4993_v31 }
 0x1f3   :  { %3628 = vmatprep.mubr.f32.mxu1 %v4905_v38  ;;  %v5437_v38 = vld [vmem:[#allocation5_spill] sm:$0xff] }
 0x1f4   :  { %3966 = vmatpush3.bf16.xpose.msra.mxu0 %v3965_v34 }
 0x1f5   :  { %3967 = vmatprep.subr.bf16.mxu0 %v5418_v45 }
 0x1f6   :  { %3629 = vmatmul.mubr.f32.gmra.mrb[6].mxu1 %v4936_v20  ;;  %v4031_v20 = vpack.c.bf16 %v4865_v57, %v4845_v0 }
 0x1f7   :  { %3631 = vmatprep.mubr.f32.mxu1 %v4950_v62 }
 0x1fa   :  { %3632 = vmatmul.mubr.f32.gmra.mrb[8].mxu1 %v4958_v12 }
 0x1fb   :  { %3634 = vmatprep.mubr.f32.mxu1 %v4984_v51 }
 0x1fc   :  { %3969 = vmatpush3.bf16.xpose.msra.mxu0 %v5422_v59 }
 0x1fd   :  { %3970 = vmatprep.subr.bf16.mxu0 %v5418_v45 }
 0x1fe   :  { %3635 = vmatmul.mubr.f32.gmra.mrb[10].mxu1 %v4987_v58 }
 0x1ff   :  { %3637 = vmatprep.mubr.f32.mxu1 %v4993_v31 }
 0x202   :  { %3638 = vmatmul.mubr.f32.gmra.mrb[12].mxu1 %v5013_v47 }
 0x203   :  { %3640 = vmatprep.mubr.f32.mxu1 %v5035_v24 }
 0x204   :  { %3972 = vmatpush3.bf16.xpose.msra.mxu0 %v5423_v11 }
 0x205   :  { %3973 = vmatprep.subr.bf16.mxu0 %v5418_v45 }
 0x206   :  { %3641 = vmatmul.mubr.f32.gmra.mrb[14].mxu1 %v5056_v21 }
 0x207   :  { %3645 = vmatprep.mubr.f32.mxu1 %v4827_v39 }
 0x20a   :  { %3646 = vmatmul.mubr.f32.vlgmr.msra.gmra.mrb[0].mxu1 %v4822_v16 }
 0x20b   :  { %3670 = vmatpush3.msra.mxu1 %v4744_v19  ;;  %3648 = vmatprep.mubr.f32.mxu1 %v4845_v0  ;;  %v5427_v19 = vpack.c.bf16 %v5080_v48, %v5070_v23  ;;  %v5432_v48 = vld [vmem:[#allocation16_spill] sm:$0xff]  ;;  %v5433_v23 = vld [vmem:[#allocation17_spill] sm:$0xff] }
 0x20c   :  { %3975 = vmatpush3.bf16.xpose.msra.mxu0 %v5424_v7  ;;  %3695 = vmatprep.subr.mxu1 %v4736_v14  ;;  %v4043_v0 = vpack.c.bf16 %v5432_v48, %v5431_v35 }
 0x20d   :  { %3976 = vmatprep.subr.bf16.mxu0 %v5418_v45 }
 0x20e   :  { %3649 = vmatmul.mubr.f32.gmra.mrb[2].mxu1 %v4865_v57  ;;  %v4046_v57 = vpack.c.bf16 %v5434_v43, %v5433_v23 }
 0x20f   :  { %3651 = vmatprep.mubr.f32.mxu1 %v4886_v52 }
 0x212   :  { %3652 = vmatmul.mubr.f32.gmra.mrb[4].mxu1 %v5425_v22 }
 0x213   :  { %3654 = vmatprep.mubr.f32.mxu1 %v5426_v61 }
 0x214   :  { %3978 = vmatpush3.bf16.xpose.msra.mxu0 %v5427_v19 }
 0x215   :  { %3979 = vmatprep.subr.bf16.mxu0 %v5418_v45 }
 0x216   :  { %3655 = vmatmul.mubr.f32.gmra.mrb[6].mxu1 %v5428_v10 }
 0x217   :  { %3657 = vmatprep.mubr.f32.mxu1 %v5429_v32 }
 0x21a   :  { %3658 = vmatmul.mubr.f32.gmra.mrb[8].mxu1 %v5430_v17 }
 0x21b   :  { %3660 = vmatprep.mubr.f32.mxu1 %v5431_v35  ;;  %3789 = vmatmul.mubr.f32.vlgmr.msra.gmra.mrb[16].mxu0 %v5090_v41 }
 0x21c   :  { %3981 = vmatpush3.bf16.xpose.msra.mxu0 %v3980_v54  ;;  %3823 = vmatprep.mubr.msk.f32.mxu0 %vm4359_vm2, %v5421_v53 }
 0x21d   :  { %3982 = vmatprep.subr.bf16.mxu0 %v5418_v45 }
 0x21e   :  { %3661 = vmatmul.mubr.f32.gmra.mrb[10].mxu1 %v5432_v48 }
 0x21f   :  { %3663 = vmatprep.mubr.f32.mxu1 %v5433_v23 }
 0x222   :  { %3664 = vmatmul.mubr.f32.gmra.mrb[12].mxu1 %v5434_v43 }
 0x223   :  { %3666 = vmatprep.mubr.f32.mxu1 %v5435_v27 }
 0x224   :  { %3984 = vmatpush3.bf16.xpose.msra.mxu0 %v3983_v4 }
 0x225   :  { %3985 = vmatprep.subr.bf16.mxu0 %v5418_v45 }
 0x226   :  { %3667 = vmatmul.mubr.f32.gmra.mrb[14].mxu1 %v5065_v13 }
 0x227   :  { %3671 = vmatprep.mubr.f32.mxu1 %v4792_v50 }
 0x22a   :  { %3672 = vmatmul.mubr.f32.vlgmr.msra.gmra.mrb[0].mxu1 %v4787_v6 }
 0x22b   :  { %3696 = vmatpush3.msra.mxu1 %v4736_v14  ;;  %3674 = vmatprep.mubr.f32.mxu1 %v4810_v37  ;;  %v3992_v14 = vpack.c.bf16 %v4958_v12, %v4950_v62 }
 0x22c   :  { %3987 = vmatpush3.bf16.xpose.msra.mxu0 %v3986_v63  ;;  %4003 = vmatprep.subr.bf16.mxu1 %v5418_v45 }
 0x22d   :  { %3988 = vmatprep.subr.bf16.mxu0 %v5418_v45 }
 0x22e   :  { %3675 = vmatmul.mubr.f32.gmra.mrb[2].mxu1 %v4808_v36 }
 0x22f   :  { %3677 = vmatprep.mubr.f32.mxu1 %v4860_v44 }
 0x232   :  { %3678 = vmatmul.mubr.f32.gmra.mrb[4].mxu1 %v4880_v30 }
 0x233   :  { %3680 = vmatprep.mubr.f32.mxu1 %v5436_v3 }
 0x234   :  { %3990 = vmatpush3.bf16.xpose.msra.mxu0 %v3989_v42 }
 0x235   :  { %3991 = vmatprep.subr.bf16.mxu0 %v5418_v45 }
 0x236   :  { %3681 = vmatmul.mubr.f32.gmra.mrb[6].mxu1 %v4924_v9 }
 0x237   :  { %3683 = vmatprep.mubr.f32.mxu1 %v4938_v28 }
 0x23a   :  { %3684 = vmatmul.mubr.f32.gmra.mrb[8].mxu1 %v4943_v40 }
 0x23b   :  { %3686 = vmatprep.mubr.f32.mxu1 %v4968_v55 }
 0x23c   :  { %3993 = vmatpush3.bf16.xpose.msra.mxu0 %v3992_v14 }
 0x23d   :  { %3994 = vmatprep.subr.bf16.mxu0 %v5418_v45 }
 0x23e   :  { %3687 = vmatmul.mubr.f32.gmra.mrb[10].mxu1 %v4970_v60 }
 0x23f   :  { %3689 = vmatprep.mubr.f32.mxu1 %v4976_v1 }
 0x242   :  { %3690 = vmatmul.mubr.f32.gmra.mrb[12].mxu1 %v4995_v29 }
 0x243   :  { %3692 = vmatprep.mubr.f32.mxu1 %v5015_v25 }
 0x244   :  { %3996 = vmatpush3.bf16.xpose.msra.mxu0 %v3995_v8 }
 0x245   :  { %3997 = vmatprep.subr.bf16.mxu0 %v5418_v45 }
 0x246   :  { %3693 = vmatmul.mubr.f32.gmra.mrb[14].mxu1 %v5042_v33 }
 0x247   :  { %3697 = vmatprep.mubr.f32.mxu1 %v4792_v50  ;;  %v5438_v50 = vld [vmem:[#allocation6_spill] sm:$0xff] }
 0x24a   :  { %3698 = vmatmul.mubr.f32.vlgmr.msra.gmra.mrb[0].mxu1 %v4787_v6  ;;  %v4001_v6 = vpack.c.bf16 %v5056_v21, %v5035_v24 }
 0x24b   :  { %4005 = vmatpush3.bf16.xpose.msra.mxu1 %v5437_v38  ;;  %3700 = vmatprep.mubr.f32.mxu1 %v4810_v37  ;;  %v5440_v37 = vld [vmem:[#allocation12_spill] sm:$0xff] }
 0x24c   :  { %4006 = vmatprep.subr.bf16.mxu1 %v5418_v45  ;;  %3999 = vmatpush3.bf16.xpose.msra.mxu0 %v3998_v15 }
 0x24d   :  { %4000 = vmatprep.subr.bf16.mxu0 %v5418_v45 }
 0x24e   :  { %3701 = vmatmul.mubr.f32.gmra.mrb[2].mxu1 %v4808_v36  ;;  %v5439_v36 = vld [vmem:[#allocation8_spill] sm:$0xff] }
 0x24f   :  { %3703 = vmatprep.mubr.f32.mxu1 %v4860_v44  ;;  %v5441_v44 = vld [vmem:[#allocation18_spill] sm:$0xff] }
 0x252   :  { %3704 = vmatmul.mubr.f32.gmra.mrb[4].mxu1 %v4880_v30  ;;  %v5442_v30 = vld [vmem:[#allocation21_spill] sm:$0xff] }
 0x253   :  { %4008 = vmatpush3.bf16.xpose.msra.mxu1 %v5438_v50  ;;  %3706 = vmatprep.mubr.f32.mxu1 %v5436_v3 }
 0x254   :  { %4009 = vmatprep.subr.bf16.mxu1 %v5418_v45  ;;  %4002 = vmatpush3.bf16.xpose.msra.mxu0 %v4001_v6 }
 0x256   :  { %3707 = vmatmul.mubr.f32.gmra.mrb[6].mxu1 %v4924_v9  ;;  %v5443_v9 = vld [vmem:[#allocation22_spill] sm:$0xff] }
 0x257   :  { %3709 = vmatprep.mubr.f32.mxu1 %v4938_v28  ;;  %v4034_v28 = vpack.c.bf16 %v5425_v22, %v4886_v52  ;;  %v4049_v52 = vpack.c.bf16 %v5065_v13, %v5435_v27 }
 0x25a   :  { %3710 = vmatmul.mubr.f32.gmra.mrb[8].mxu1 %v4943_v40 }
 0x25b   :  { %4011 = vmatpush3.bf16.xpose.msra.mxu1 %v5439_v36  ;;  %3712 = vmatprep.mubr.f32.mxu1 %v4968_v55 }
 0x25c   :  { %4012 = vmatprep.subr.bf16.mxu1 %v5418_v45  ;;  %3824 = vmatmul.mubr.f32.vlgmr.msra.gmra.mrb[16].mxu0 %v5100_v5 }
 0x25e   :  { %3713 = vmatmul.mubr.f32.gmra.mrb[10].mxu1 %v4970_v60 }
 0x25f   :  { %3715 = vmatprep.mubr.f32.mxu1 %v4976_v1 }
 0x262   :  { %3716 = vmatmul.mubr.f32.gmra.mrb[12].mxu1 %v4995_v29 }
 0x263   :  { %4014 = vmatpush3.bf16.xpose.msra.mxu1 %v5440_v37  ;;  %3718 = vmatprep.mubr.f32.mxu1 %v5015_v25  ;;  %v4028_v25 = vpack.c.bf16 %v4822_v16, %v4827_v39  ;;  %v4037_v16 = vpack.c.bf16 %v5428_v10, %v5426_v61  ;;  %v4040_v39 = vpack.c.bf16 %v5430_v17, %v5429_v32 }
 0x264   :  { %4015 = vmatprep.subr.bf16.mxu1 %v5418_v45 }
 0x266   :  { %3719 = vmatmul.mubr.f32.gmra.mrb[14].mxu1 %v5042_v33 }
 0x267   :  { %3858 = vmatprep.mubr.msk.f32.mxu1 %vm4359_vm2, %v5421_v53 }
 0x26b   :  { %4017 = vmatpush3.bf16.xpose.msra.mxu1 %v5441_v44 }
 0x26c   :  { %4018 = vmatprep.subr.bf16.mxu1 %v5418_v45 }
 0x273   :  { %4020 = vmatpush3.bf16.xpose.msra.mxu1 %v5442_v30 }
 0x274   :  { %4021 = vmatprep.subr.bf16.mxu1 %v5418_v45 }
 0x27b   :  { %4023 = vmatpush3.bf16.xpose.msra.mxu1 %v5443_v9 }
 0x27c   :  { %4024 = vmatprep.subr.bf16.mxu1 %v5418_v45 }
 0x283   :  { %4026 = vmatpush3.bf16.xpose.msra.mxu1 %v5111_v18 }
 0x284   :  { %4027 = vmatprep.subr.bf16.mxu1 %v5418_v45 }
 0x28a   :  { %3859 = vmatmul.mubr.f32.vlgmr.msra.gmra.mrb[16].mxu1 %v2521_v46 }
 0x28b   :  { %4029 = vmatpush3.bf16.xpose.msra.mxu1 %v4028_v25  ;;  %3893 = vmatprep.mubr.msk.f32.mxu1 %vm4359_vm2, %v5421_v53 }
 0x28c   :  { %4030 = vmatprep.subr.bf16.mxu1 %v5418_v45 }
 0x293   :  { %4032 = vmatpush3.bf16.xpose.msra.mxu1 %v4031_v20 }
 0x294   :  { %4033 = vmatprep.subr.bf16.mxu1 %v5418_v45 }
 0x29b   :  { %4035 = vmatpush3.bf16.xpose.msra.mxu1 %v4034_v28 }
 0x29c   :  { %4036 = vmatprep.subr.bf16.mxu1 %v5418_v45 }
 0x2a3   :  { %4038 = vmatpush3.bf16.xpose.msra.mxu1 %v4037_v16 }
 0x2a4   :  { %4039 = vmatprep.subr.bf16.mxu1 %v5418_v45 }
 0x2ab   :  { %4041 = vmatpush3.bf16.xpose.msra.mxu1 %v4040_v39 }
 0x2ac   :  { %4042 = vmatprep.subr.bf16.mxu1 %v5418_v45 }
 0x2b3   :  { %4044 = vmatpush3.bf16.xpose.msra.mxu1 %v4043_v0 }
 0x2b4   :  { %4045 = vmatprep.subr.bf16.mxu1 %v5418_v45 }
 0x2bb   :  { %4047 = vmatpush3.bf16.xpose.msra.mxu1 %v4046_v57 }
 0x2bc   :  { %4048 = vmatprep.subr.bf16.mxu1 %v5418_v45 }
 0x2c3   :  { %4050 = vmatpush3.bf16.xpose.msra.mxu1 %v4049_v52 }
 0x2c4   :  { %4051 = vmatprep.subr.bf16.mxu1 %v5418_v45 }
 0x2ca   :  { %3894 = vmatmul.mubr.f32.vlgmr.msra.gmra.mrb[16].mxu1 %v5090_v41 }
 0x2cb   :  { %4053 = vmatpush3.bf16.xpose.msra.mxu1 %v5437_v38  ;;  %3928 = vmatprep.mubr.msk.f32.mxu1 %vm4359_vm2, %v5421_v53  ;;  %v3102_v53 = vld [vmem:[%s5358_s4] ss:$0 sm:$0xff] }
 0x2cc   :  { %4054 = vmatprep.subr.bf16.mxu1 %v5418_v45 }
 0x2d3   :  { %4056 = vmatpush3.bf16.xpose.msra.mxu1 %v5438_v50 }
 0x2d4   :  { %4057 = vmatprep.subr.bf16.mxu1 %v5418_v45 }
 0x2db   :  { %4059 = vmatpush3.bf16.xpose.msra.mxu1 %v5439_v36 }
 0x2dc   :  { %4060 = vmatprep.subr.bf16.mxu1 %v5418_v45 }
 0x2e3   :  { %4062 = vmatpush3.bf16.xpose.msra.mxu1 %v5440_v37 }
 0x2e4   :  { %4063 = vmatprep.subr.bf16.mxu1 %v5418_v45 }
 0x2eb   :  { %4065 = vmatpush3.bf16.xpose.msra.mxu1 %v5441_v44 }
 0x2ec   :  { %4066 = vmatprep.subr.bf16.mxu1 %v5418_v45 }
 0x2f3   :  { %4068 = vmatpush3.bf16.xpose.msra.mxu1 %v5442_v30 }
 0x2f4   :  { %4069 = vmatprep.subr.bf16.mxu1 %v5418_v45 }
 0x2fb   :  { %4071 = vmatpush3.bf16.xpose.msra.mxu1 %v5443_v9 }
 0x2fc   :  { %4072 = vmatprep.subr.bf16.mxu1 %v5418_v45 }
 0x303   :  { %4074 = vmatpush3.bf16.xpose.msra.mxu1 %v5111_v18 }
 0x30a   :  { %3929 = vmatmul.mubr.f32.vlgmr.msra.gmra.mrb[16].mxu1 %v5090_v41 }
 0x31d   :  { %v3699_v40 = vpop.f32.mrb[0].mxu1 }
 0x31e   :  { %v4091_v33 = vadd.f32 %v3699_v40, %v3102_v53  ;;  %v2324_v62 = vpop.f32.mrb[1].mxu1 }
 0x31f   :  { %v4092_v12 = vadd.f32 %v3102_v53, %v2324_v62 }
 0x320   :  { %2419 = vst.msk [vmem:[#allocation2 + $0x8] sm:$0xff] %vm50_vm0, %v4091_v33 }
 0x321   :  { %2418 = vst.msk [vmem:[#allocation2] sm:$0xff] %vm50_vm0, %v4092_v12  ;;  %v3702_v55 = vpop.f32.mrb[2].mxu1 }
 0x322   :  { %v4093_v60 = vadd.f32 %v3702_v55, %v3102_v53  ;;  %v2336_v1 = vpop.f32.mrb[3].mxu1 }
 0x323   :  { %v4094_v51 = vadd.f32 %v3102_v53, %v2336_v1 }
 0x324   :  { %2421 = vst.msk [vmem:[#allocation2 + $0x18] sm:$0xff] %vm50_vm0, %v4093_v60 }
 0x325   :  { %2420 = vst.msk [vmem:[#allocation2 + $0x10] sm:$0xff] %vm50_vm0, %v4094_v51  ;;  %v3705_v58 = vpop.f32.mrb[4].mxu1 }
 0x326   :  { %v4095_v31 = vadd.f32 %v3705_v58, %v3102_v53  ;;  %v2348_v29 = vpop.f32.mrb[5].mxu1 }
 0x327   :  { %v4096_v24 = vadd.f32 %v3102_v53, %v2348_v29 }
 0x328   :  { %2423 = vst.msk [vmem:[#allocation2 + $0x28] sm:$0xff] %vm50_vm0, %v4095_v31 }
 0x329   :  { %2422 = vst.msk [vmem:[#allocation2 + $0x20] sm:$0xff] %vm50_vm0, %v4096_v24  ;;  %v3708_v47 = vpop.f32.mrb[6].mxu1 }
 0x32a   :  { %v4097_v13 = vadd.f32 %v3708_v47, %v3102_v53  ;;  %v2360_v21 = vpop.f32.mrb[7].mxu1 }
 0x32b   :  { %v4098_v45 = vadd.f32 %v3102_v53, %v2360_v21 }
 0x32c   :  { %2425 = vst.msk [vmem:[#allocation2 + $0x38] sm:$0xff] %vm50_vm0, %v4097_v13 }
 0x32d   :  { %2424 = vst.msk [vmem:[#allocation2 + $0x30] sm:$0xff] %vm50_vm0, %v4098_v45  ;;  %v3711_v26 = vpop.f32.mrb[8].mxu1 }
 0x32e   :  { %v4099_v5 = vadd.f32 %v3711_v26, %v3102_v53  ;;  %v2372_v41 = vpop.f32.mrb[9].mxu1 }
 0x32f   :  { %v4100_v56 = vadd.f32 %v3102_v53, %v2372_v41  ;;  %v2780_v46 = vpop.f32.mrb[16].mxu0 }
 0x330   :  { %2427 = vst.msk [vmem:[#allocation2 + $0x48] sm:$0xff] %vm50_vm0, %v4099_v5  ;;  %v3825_v18 = vpop.f32.mrb[17].mxu0  ;;  %v4107_v54 = vadd.f32 500.0, %v2780_v46 }
 0x331   :  { %2426 = vst.msk [vmem:[#allocation2 + $0x40] sm:$0xff] %vm50_vm0, %v4100_v56  ;;  %v3714_v49 = vpop.f32.mrb[10].mxu1 }
 0x332   :  { %v4101_v2 = vadd.f32 %v3714_v49, %v3102_v53  ;;  %v2384_v34 = vpop.f32.mrb[11].mxu1 }
 0x333   :  { %v4102_v59 = vadd.f32 %v3102_v53, %v2384_v34 }
 0x334   :  { %2429 = vst.msk [vmem:[#allocation2 + $0x58] sm:$0xff] %vm50_vm0, %v4101_v2 }
 0x335   :  { %2428 = vst.msk [vmem:[#allocation2 + $0x50] sm:$0xff] %vm50_vm0, %v4102_v59  ;;  %v3717_v11 = vpop.f32.mrb[12].mxu1 }
 0x336   :  { %v4103_v7 = vadd.f32 %v3717_v11, %v3102_v53  ;;  %v2396_v22 = vpop.f32.mrb[13].mxu1 }
 0x337   :  { %v4104_v61 = vadd.f32 %v3102_v53, %v2396_v22 }
 0x338   :  { %2431 = vst.msk [vmem:[#allocation2 + $0x68] sm:$0xff] %vm50_vm0, %v4103_v7 }
 0x339   :  { %2430 = vst.msk [vmem:[#allocation2 + $0x60] sm:$0xff] %vm50_vm0, %v4104_v61  ;;  %v3720_v19 = vpop.f32.mrb[14].mxu1 }
 0x33a   :  { %v4105_v10 = vadd.f32 %v3720_v19, %v3102_v53  ;;  %v2408_v32 = vpop.f32.mrb[15].mxu1 }
 0x33b   :  { %v4106_v17 = vadd.f32 %v3102_v53, %v2408_v32 }
 0x33c   :  { %2433 = vst.msk [vmem:[#allocation2 + $0x78] sm:$0xff] %vm50_vm0, %v4105_v10 }
 0x33d   :  { %2432 = vst.msk [vmem:[#allocation2 + $0x70] sm:$0xff] %vm50_vm0, %v4106_v17 }
 0x3dd   :  { %v3075_v35 = vpop.f32.mrb[16].mxu1 }
 0x3de   :  { %v4108_v48 = vadd.f32 %v4107_v54, %v3075_v35  ;;  %v3930_v23 = vpop.f32.mrb[17].mxu1 }
 0x3e0   :  { %v4295_v43 = vcvt.f32.s32 %v4108_v48 }
 0x3e2   :  { %3080 = vst [vmem:[%s5361_s7] sm:$0x1] %v4295_v43 }
 0x3e3   :  { %3085 = vsyncadd [#allocation3], 1792  ;;  %s4361_s15 = smov [#allocation2]  }
 0x3e4   :  { %s3086_s16 = sshll.u32 %s4361_s15, 4  ;;  %s3087_s16 = int_to_ptr.vmem [resolvable:$true] %s3086_s16 }
 0x3e5   :  { %s4334_s17 = scalar_lea.vmem %s3087_s16, 256  ;;  %s4338_s18 = scalar_lea.vmem %s3087_s16, 2048 }
 0x3e6   :  { %p4335_p0 = scmp.ne.s32.totalorder %s3087_s16, %s4334_s17  ;;  %p4339_p1 = scmp.lt.s32.totalorder %s3087_s16, %s3087_s16 }
 0x3e7   :  { %p4340_p2 = scmp.lt.s32.totalorder %s4338_s18, %s4334_s17 }
 0x3e9   :  { %p4341_p3 = por %p4340_p2, %p4339_p1 }
 0x3eb   :  { %p4342_p4 = pnand %p4341_p3, %p4335_p0 }
 0x3ed   :  { %4345 = shalt.err (!%p4342_p4)
}
 0x3ee   :  { %s4346_s21 = scalar_lea.hbm %s5360_s6, 256 }
 0x3ef   :  { %p4347_p5 = scmp.ne.s32.totalorder %s5360_s6, %s4346_s21  ;;  %p4350_p6 = scmp.lt.u32.totalorder %s4346_s21, %s5360_s6 }
 0x3f1   :  { %p4352_p7 = pnand %p4350_p6, %p4347_p5 }
 0x3f3   :  { %4355 = shalt.err (!%p4352_p7)
}
 0x3f4   :  { %s4362_s25 = smov 128   ;;  %s4363_s26 = smov 8  }
 0x3f5   :  { %3092 = dma.vmem_to_hbm [thread:$0]  %s3087_s16, 256, %s5360_s6, [#allocation3], %s4362_s25, %s4362_s25, %s4363_s26  }
 0x3f6   :  { %4356 = dma.done.wait [#allocation3], 2048  }
 0x3f7   :  { %4357 = vsyncadd [#allocation3], 4294965248 }
 0x3f8   :  { %3100 = vsyncpa [#allocation3], 1 }

</bundles_post_ra>
